<compile_context>
chip_gen: v7x
topology: tpu7x:2x2x1
jax: 0.10.0
libtpu: 0.0.40
codegen_flags: <defaults>
</compile_context>

<pallas_src>
import jax
import jax.numpy as jnp
from jax import lax
from jax.experimental import pallas as pl
from jax.experimental.pallas import tpu as pltpu

EPS = 1e-5          # nn.BatchNorm2d default eps
SLOPE = 0.2         # nn.LeakyReLU(0.2)
LANE = 128          # TPU lane width
MAX_TM = 512        # max rows per M tile
VMEM_LIMIT = 48 * 1024 * 1024


def _round_up(x, m):
    return (x + m - 1) // m * m


# ---------------------------------------------------------------------------
# Kernel 1: tiled conv-as-matmul + per-channel sum / sum-of-squares (BN pass 1)
# ---------------------------------------------------------------------------
def _conv_stats_kernel(p_ref, w_ref, y_ref, sum_ref, ssq_ref):
    @pl.when(pl.program_id(0) == 0)
    def _init():
        sum_ref[...] = jnp.zeros_like(sum_ref)
        ssq_ref[...] = jnp.zeros_like(ssq_ref)

    # bf16 x bf16 -> f32 on the MXU
    y = jnp.dot(p_ref[...], w_ref[...], preferred_element_type=jnp.float32)
    y_ref[...] = y
    # one-pass stats: accumulate sum and sum-of-squares per channel
    sum_ref[...] += jnp.sum(y, axis=0, keepdims=True)
    ssq_ref[...] += jnp.sum(y * y, axis=0, keepdims=True)


def conv_stats_call(patches, w, tm):
    m_pad, k = patches.shape
    c = w.shape[1]
    flops = 2 * m_pad * k * c
    bytes_accessed = m_pad * k * 2 + k * c * 2 + m_pad * c * 4 + 2 * c * 4
    return pl.pallas_call(
        _conv_stats_kernel,
        out_shape=(jax.ShapeDtypeStruct((m_pad, c), jnp.float32),
                   jax.ShapeDtypeStruct((1, c), jnp.float32),
                   jax.ShapeDtypeStruct((1, c), jnp.float32)),
        grid=(m_pad // tm,),
        in_specs=[pl.BlockSpec((tm, k), lambda i: (i, 0)),
                  pl.BlockSpec((k, c), lambda i: (0, 0))],       # weights stay resident
        out_specs=(pl.BlockSpec((tm, c), lambda i: (i, 0)),
                   pl.BlockSpec((1, c), lambda i: (0, 0)),       # VMEM-resident accumulator
                   pl.BlockSpec((1, c), lambda i: (0, 0))),
        compiler_params=pltpu.CompilerParams(
            dimension_semantics=("arbitrary",),   # stats accumulate across M tiles
            vmem_limit_bytes=VMEM_LIMIT),
        cost_estimate=pl.CostEstimate(flops=flops, transcendentals=0,
                                      bytes_accessed=bytes_accessed),
    )(patches, w)


# ---------------------------------------------------------------------------
# Kernel 2: BN affine + channel-masked LeakyReLU (BN pass 2)
# ---------------------------------------------------------------------------
def _norm_act_kernel(y_ref, scale_ref, shift_ref, mask_ref, o_ref):
    y = y_ref[...] * scale_ref[...] + shift_ref[...]
    act = jnp.where(y >= 0, y, SLOPE * y)
    o_ref[...] = jnp.where(mask_ref[...] != 0, act, y)


def norm_act_call(y, scale, shift, mask, tm):
    m_pad, c = y.shape
    return pl.pallas_call(
        _norm_act_kernel,
        out_shape=jax.ShapeDtypeStruct((m_pad, c), jnp.float32),
        grid=(m_pad // tm,),
        in_specs=[pl.BlockSpec((tm, c), lambda i: (i, 0)),
                  pl.BlockSpec((1, c), lambda i: (0, 0)),
                  pl.BlockSpec((1, c), lambda i: (0, 0)),
                  pl.BlockSpec((1, c), lambda i: (0, 0))],
        out_specs=pl.BlockSpec((tm, c), lambda i: (i, 0)),
        compiler_params=pltpu.CompilerParams(
            dimension_semantics=("parallel",),    # independent tiles -> megacore-friendly
            vmem_limit_bytes=VMEM_LIMIT),
    )(y, scale, shift, mask)


# ---------------------------------------------------------------------------
# Kernel 3: BN affine + residual add + LeakyReLU (block epilogue)
# ---------------------------------------------------------------------------
def _norm_res_act_kernel(y_ref, scale_ref, shift_ref, r_ref, o_ref):
    y = y_ref[...] * scale_ref[...] + shift_ref[...] + r_ref[...]
    o_ref[...] = jnp.where(y >= 0, y, SLOPE * y)


def norm_res_act_call(y, scale, shift, residual, tm):
    m_pad, c = y.shape
    return pl.pallas_call(
        _norm_res_act_kernel,
        out_shape=jax.ShapeDtypeStruct((m_pad, c), jnp.float32),
        grid=(m_pad // tm,),
        in_specs=[pl.BlockSpec((tm, c), lambda i: (i, 0)),
                  pl.BlockSpec((1, c), lambda i: (0, 0)),
                  pl.BlockSpec((1, c), lambda i: (0, 0)),
                  pl.BlockSpec((tm, c), lambda i: (i, 0))],
        out_specs=pl.BlockSpec((tm, c), lambda i: (i, 0)),
        compiler_params=pltpu.CompilerParams(
            dimension_semantics=("parallel",),
            vmem_limit_bytes=VMEM_LIMIT),
    )(y, scale, shift, residual)


# ---------------------------------------------------------------------------
# Host-side glue (tiny per-channel math, im2col, padding)
# ---------------------------------------------------------------------------
def _bn_scale_shift(s, q, m_real, gamma, beta):
    # training-mode BN: biased variance over the N*H*W axis; E[y^2]-E[y]^2, clamped.
    mean = s / m_real
    var = jnp.maximum(q / m_real - mean * mean, 0.0)
    rstd = lax.rsqrt(var + EPS)
    scale = gamma * rstd
    shift = beta - mean * scale
    return scale, shift


def _im2col(x, stride):
    # 3x3 / pad=1 / dilation=1, NHWC. Patch K layout: (kh, kw, cin) tap-major.
    n, h, w, c = x.shape
    ho = (h - 1) // stride + 1
    wo = (w - 1) // stride + 1
    xp = jnp.pad(x, ((0, 0), (1, 1), (1, 1), (0, 0)))
    cols = []
    for kh in range(3):
        for kw in range(3):
            cols.append(xp[:, kh:kh + stride * (ho - 1) + 1:stride,
                              kw:kw + stride * (wo - 1) + 1:stride, :])
    pat = jnp.concatenate(cols, axis=-1)                # (N, Ho, Wo, 9*C)
    return pat.reshape(n * ho * wo, 9 * c), (n, ho, wo)


def _pad_w(w, cp):
    # (3,3,cin,cout) -> (9*cin, cp), zero padded on Cout (padded channels stay 0)
    kh, kw, cin, cout = w.shape
    return jnp.pad(w.reshape(kh * kw * cin, cout), ((0, 0), (0, cp - cout)))


def _pad_vec(v, cp, value=0.0):
    return jnp.pad(v, (0, cp - v.shape[0]), constant_values=value).reshape(1, cp)


# ---------------------------------------------------------------------------
# ResBlock / ResDown forward
# ---------------------------------------------------------------------------
def res_block_forward(x_img, p, stride):
    cout = p["w1"].shape[-1]
    cp = _round_up(cout, LANE)
    diff = "w_adj" in p

    # ---- patches for the (fused) first matmul, bf16 before im2col ----
    patches1, (n_, ho, wo) = _im2col(x_img.astype(jnp.bfloat16), stride)
    m = n_ * ho * wo
    tm = min(MAX_TM, _round_up(m, 16))
    m_pad = _round_up(m, tm)
    patches1 = jnp.pad(patches1, ((0, m_pad - m), (0, 0)))   # zero rows -> zero conv rows

    if diff:
        # Fuse shortcut conv (adjust_conv) with conv1: concat weights along Cout.
        w_cat = jnp.concatenate([_pad_w(p["w_adj"], cp), _pad_w(p["w1"], cp)], axis=1)
        gamma = jnp.concatenate([_pad_vec(p["g_adj"], cp, 1.0),
                                 _pad_vec(p["g1"], cp, 1.0)], axis=1)
        beta = jnp.concatenate([_pad_vec(p["b_adj"], cp), _pad_vec(p["b1"], cp)], axis=1)
        mask = jnp.concatenate([jnp.zeros((1, cp), jnp.float32),   # shortcut half: no act
                                jnp.ones((1, cp), jnp.float32)], axis=1)
    else:
        w_cat = _pad_w(p["w1"], cp)
        gamma = _pad_vec(p["g1"], cp, 1.0)
        beta = _pad_vec(p["b1"], cp)
        mask = jnp.ones((1, cp), jnp.float32)

    # conv(+shortcut conv) -> global BN stats -> normalize (+LeakyReLU on conv1 half)
    y1, s1, q1 = conv_stats_call(patches1, w_cat.astype(jnp.bfloat16), tm)
    scale1, shift1 = _bn_scale_shift(s1, q1, m, gamma, beta)
    z1 = norm_act_call(y1, scale1, shift1, mask, tm)

    if diff:
        x_s = z1[:, :cp]                     # BN'd shortcut (pad rows unused, sliced later)
        h1 = z1[:, cp:]
    else:
        x_flat = x_img.reshape(m, cout)      # identity shortcut
        x_s = jnp.pad(x_flat, ((0, m_pad - m), (0, cp - cout)))
        h1 = z1

    # second conv of the block (stride 1) on the activated intermediate
    h1_img = h1[:m, :cout].astype(jnp.bfloat16).reshape(n_, ho, wo, cout)
    patches2, _ = _im2col(h1_img, 1)
    patches2 = jnp.pad(patches2, ((0, m_pad - m), (0, 0)))

    y2, s2, q2 = conv_stats_call(patches2, _pad_w(p["w2"], cp).astype(jnp.bfloat16), tm)
    scale2, shift2 = _bn_scale_shift(s2, q2, m,
                                     _pad_vec(p["g2"], cp, 1.0), _pad_vec(p["b2"], cp))
    out = norm_res_act_call(y2, scale2, shift2, x_s, tm)      # BN + shortcut + LeakyReLU
    return out[:m, :cout].reshape(n_, ho, wo, cout)


def res_down_forward(x_nchw, params):
    x = jnp.transpose(x_nchw, (0, 2, 3, 1))                   # NCHW -> NHWC
    strides = [2] + [1] * (len(params) - 1)
    for p, s in zip(params, strides):
        x = res_block_forward(x, p, s)
    return jnp.transpose(x, (0, 3, 1, 2))                     # NHWC -> NCHW


# ---------------------------------------------------------------------------
# Deterministic parameter init (shapes per ResBlock.__init__, norm='BatchNorm')
# ---------------------------------------------------------------------------
def init_res_block(key, cin, cout, diff):
    k1, k2, k3 = jax.random.split(key, 3)
    p = {
        "w1": jax.random.normal(k1, (3, 3, cin, cout), jnp.float32) * 0.1,
        "g1": jnp.ones((cout,), jnp.float32),
        "b1": jnp.zeros((cout,), jnp.float32),
        "w2": jax.random.normal(k2, (3, 3, cout, cout), jnp.float32) * 0.1,
        "g2": jnp.ones((cout,), jnp.float32),
        "b2": jnp.zeros((cout,), jnp.float32),
    }
    if diff:
        p["w_adj"] = jax.random.normal(k3, (3, 3, cin, cout), jnp.float32) * 0.1
        p["g_adj"] = jnp.ones((cout,), jnp.float32)
        p["b_adj"] = jnp.zeros((cout,), jnp.float32)
    return p


def init_res_down(key, cin, cout, blocks=2):
    keys = jax.random.split(key, blocks)
    params = [init_res_block(keys[0], cin, cout, diff=True)]   # stride=2 block
    for i in range(1, blocks):
        params.append(init_res_block(keys[i], cout, cout, diff=False))
    return params


if __name__ == "__main__":
    key = jax.random.PRNGKey(0)
    kx, kp = jax.random.split(key)

    in_ch, out_ch = 4, 8
    x = jax.random.normal(kx, (2, in_ch, 16, 16), jnp.float32)   # NCHW like PyTorch
    params = init_res_down(kp, in_ch, out_ch, blocks=2)

    out = jax.jit(res_down_forward)(x, params)
    out = jax.block_until_ready(out)
    assert out.shape == (2, out_ch, 8, 8), out.shape
    assert bool(jnp.all(jnp.isfinite(out)))
    print("KERNEL_OK")
</pallas_src>

<mosaic_0001>
module attributes {stable_mosaic.version = 11 : i64} {
  func.func @_conv_stats_kernel(%arg0: i32, %arg1: memref<128x36xbf16, #tpu.memory_space<vmem>>, %arg2: memref<36x256xbf16, #tpu.memory_space<vmem>>, %arg3: memref<128x256xf32, #tpu.memory_space<vmem>>, %arg4: memref<1x256xf32, #tpu.memory_space<vmem>>, %arg5: memref<1x256xf32, #tpu.memory_space<vmem>>) attributes {dimension_semantics = [#tpu.dimension_semantics<arbitrary>], iteration_bounds = array<i64: 1>, scalar_prefetch = 0 : i64, scratch_operands = 0 : i64, tpu.core_type = #tpu.core_type<tc>, window_params = [{transform_indices = @transform_0, window_bounds = array<i64: 128, 36>}, {pipeline_mode = #tpu.pipeline_mode<synchronous>, transform_indices = @transform_1, window_bounds = array<i64: 36, 256>}, {transform_indices = @transform_2, window_bounds = array<i64: 128, 256>}, {pipeline_mode = #tpu.pipeline_mode<synchronous>, transform_indices = @transform_3, window_bounds = array<i64: 1, 256>}, {pipeline_mode = #tpu.pipeline_mode<synchronous>, transform_indices = @transform_4, window_bounds = array<i64: 1, 256>}]} {
    %c0_i32 = arith.constant 0 : i32
    %0 = arith.cmpi eq, %arg0, %c0_i32 : i32
    %1 = arith.extui %0 : i1 to i32
    %c0_i32_0 = arith.constant 0 : i32
    %2 = arith.cmpi ne, %1, %c0_i32_0 : i32
    scf.if %2 {
      %cst_16 = arith.constant 0.000000e+00 : f32
      %18 = vector.broadcast %cst_16 : f32 to vector<1x256xf32>
      %c0_17 = arith.constant 0 : index
      %c0_18 = arith.constant 0 : index
      %19 = vector.load %arg4[%c0_17, %c0_18] : memref<1x256xf32, #tpu.memory_space<vmem>>, vector<1x256xf32>
      tpu.vector_store %arg4[%c0_17, %c0_18], %18 {strides = array<i32>} : memref<1x256xf32, #tpu.memory_space<vmem>>, vector<1x256xf32>,
      %cst_19 = arith.constant 0.000000e+00 : f32
      %20 = vector.broadcast %cst_19 : f32 to vector<1x256xf32>
      %c0_20 = arith.constant 0 : index
      %c0_21 = arith.constant 0 : index
      %21 = vector.load %arg5[%c0_20, %c0_21] : memref<1x256xf32, #tpu.memory_space<vmem>>, vector<1x256xf32>
      tpu.vector_store %arg5[%c0_20, %c0_21], %20 {strides = array<i32>} : memref<1x256xf32, #tpu.memory_space<vmem>>, vector<1x256xf32>,
    } else {
    }
    %c0 = arith.constant 0 : index
    %c0_1 = arith.constant 0 : index
    %3 = vector.load %arg1[%c0, %c0_1] : memref<128x36xbf16, #tpu.memory_space<vmem>>, vector<128x36xbf16>
    %c0_2 = arith.constant 0 : index
    %c0_3 = arith.constant 0 : index
    %4 = vector.load %arg2[%c0_2, %c0_3] : memref<36x256xbf16, #tpu.memory_space<vmem>>, vector<36x256xbf16>
    %cst = arith.constant dense<0.000000e+00> : vector<128x256xf32>
    %5 = tpu.matmul %3, %4, %cst {dimension_numbers = #tpu.dot_dimension_numbers<[1], [0], [0], [1], [0, 0, 1, 1], [], []>} : vector<128x36xbf16>, vector<36x256xbf16>, vector<128x256xf32> -> vector<128x256xf32>
    %c0_4 = arith.constant 0 : index
    %c0_5 = arith.constant 0 : index
    %6 = vector.load %arg3[%c0_4, %c0_5] : memref<128x256xf32, #tpu.memory_space<vmem>>, vector<128x256xf32>
    tpu.vector_store %arg3[%c0_4, %c0_5], %5 {strides = array<i32>} : memref<128x256xf32, #tpu.memory_space<vmem>>, vector<128x256xf32>,
    %c0_6 = arith.constant 0 : index
    %c0_7 = arith.constant 0 : index
    %7 = vector.load %arg4[%c0_6, %c0_7] : memref<1x256xf32, #tpu.memory_space<vmem>>, vector<1x256xf32>
    %cst_8 = arith.constant dense<0.000000e+00> : vector<256xf32>
    %8 = vector.multi_reduction <add>, %5, %cst_8 [0] : vector<128x256xf32> to vector<256xf32>
    %9 = vector.shape_cast %8 : vector<256xf32> to vector<1x256xf32>
    %10 = arith.addf %7, %9 : vector<1x256xf32>
    %c0_9 = arith.constant 0 : index
    %c0_10 = arith.constant 0 : index
    %11 = vector.load %arg4[%c0_9, %c0_10] : memref<1x256xf32, #tpu.memory_space<vmem>>, vector<1x256xf32>
    tpu.vector_store %arg4[%c0_9, %c0_10], %10 {strides = array<i32>} : memref<1x256xf32, #tpu.memory_space<vmem>>, vector<1x256xf32>,
    %c0_11 = arith.constant 0 : index
    %c0_12 = arith.constant 0 : index
    %12 = vector.load %arg5[%c0_11, %c0_12] : memref<1x256xf32, #tpu.memory_space<vmem>>, vector<1x256xf32>
    %13 = arith.mulf %5, %5 : vector<128x256xf32>
    %cst_13 = arith.constant dense<0.000000e+00> : vector<256xf32>
    %14 = vector.multi_reduction <add>, %13, %cst_13 [0] : vector<128x256xf32> to vector<256xf32>
    %15 = vector.shape_cast %14 : vector<256xf32> to vector<1x256xf32>
    %16 = arith.addf %12, %15 : vector<1x256xf32>
    %c0_14 = arith.constant 0 : index
    %c0_15 = arith.constant 0 : index
    %17 = vector.load %arg5[%c0_14, %c0_15] : memref<1x256xf32, #tpu.memory_space<vmem>>, vector<1x256xf32>
    tpu.vector_store %arg5[%c0_14, %c0_15], %16 {strides = array<i32>} : memref<1x256xf32, #tpu.memory_space<vmem>>, vector<1x256xf32>,
    return
  }
  func.func @transform_0(%arg0: i32) -> (i32, i32) {
    %c0_i32 = arith.constant 0 : i32
    %c0_i32_0 = arith.constant 0 : i32
    return %arg0, %c0_i32 : i32, i32
  }
  func.func @transform_1(%arg0: i32) -> (i32, i32) {
    %c0_i32 = arith.constant 0 : i32
    %c0_i32_0 = arith.constant 0 : i32
    %c0_i32_1 = arith.constant 0 : i32
    return %c0_i32, %c0_i32_0 : i32, i32
  }
  func.func @transform_2(%arg0: i32) -> (i32, i32) {
    %c0_i32 = arith.constant 0 : i32
    %c0_i32_0 = arith.constant 0 : i32
    return %arg0, %c0_i32 : i32, i32
  }
  func.func @transform_3(%arg0: i32) -> (i32, i32) {
    %c0_i32 = arith.constant 0 : i32
    %c0_i32_0 = arith.constant 0 : i32
    %c0_i32_1 = arith.constant 0 : i32
    return %c0_i32, %c0_i32_0 : i32, i32
  }
  func.func @transform_4(%arg0: i32) -> (i32, i32) {
    %c0_i32 = arith.constant 0 : i32
    %c0_i32_0 = arith.constant 0 : i32
    %c0_i32_1 = arith.constant 0 : i32
    return %c0_i32, %c0_i32_0 : i32, i32
  }
}

module attributes {stable_mosaic.version = 11 : i64} {
  func.func @_norm_act_kernel(%arg0: i32, %arg1: memref<128x256xf32, #tpu.memory_space<vmem>>, %arg2: memref<1x256xf32, #tpu.memory_space<vmem>>, %arg3: memref<1x256xf32, #tpu.memory_space<vmem>>, %arg4: memref<1x256xf32, #tpu.memory_space<vmem>>, %arg5: memref<128x256xf32, #tpu.memory_space<vmem>>) attributes {dimension_semantics = [#tpu.dimension_semantics<parallel>], iteration_bounds = array<i64: 1>, scalar_prefetch = 0 : i64, scratch_operands = 0 : i64, tpu.core_type = #tpu.core_type<tc>, window_params = [{transform_indices = @transform_0, window_bounds = array<i64: 128, 256>}, {pipeline_mode = #tpu.pipeline_mode<synchronous>, transform_indices = @transform_1, window_bounds = array<i64: 1, 256>}, {pipeline_mode = #tpu.pipeline_mode<synchronous>, transform_indices = @transform_2, window_bounds = array<i64: 1, 256>}, {pipeline_mode = #tpu.pipeline_mode<synchronous>, transform_indices = @transform_3, window_bounds = array<i64: 1, 256>}, {transform_indices = @transform_4, window_bounds = array<i64: 128, 256>}]} {
    %c0 = arith.constant 0 : index
    %c0_0 = arith.constant 0 : index
    %0 = vector.load %arg1[%c0, %c0_0] : memref<128x256xf32, #tpu.memory_space<vmem>>, vector<128x256xf32>
    %c0_1 = arith.constant 0 : index
    %c0_2 = arith.constant 0 : index
    %1 = vector.load %arg2[%c0_1, %c0_2] : memref<1x256xf32, #tpu.memory_space<vmem>>, vector<1x256xf32>
    %2 = vector.broadcast %1 : vector<1x256xf32> to vector<128x256xf32>
    %3 = arith.mulf %0, %2 : vector<128x256xf32>
    %c0_3 = arith.constant 0 : index
    %c0_4 = arith.constant 0 : index
    %4 = vector.load %arg3[%c0_3, %c0_4] : memref<1x256xf32, #tpu.memory_space<vmem>>, vector<1x256xf32>
    %5 = vector.broadcast %4 : vector<1x256xf32> to vector<128x256xf32>
    %6 = arith.addf %3, %5 : vector<128x256xf32>
    %cst = arith.constant 0.000000e+00 : f32
    %7 = vector.broadcast %cst : f32 to vector<128x256xf32>
    %8 = arith.cmpf oge, %6, %7 : vector<128x256xf32>
    %cst_5 = arith.constant 2.000000e-01 : f32
    %9 = vector.broadcast %cst_5 : f32 to vector<128x256xf32>
    %10 = arith.mulf %9, %6 : vector<128x256xf32>
    %11 = arith.select %8, %6, %10 : vector<128x256xi1>, vector<128x256xf32>
    %c0_6 = arith.constant 0 : index
    %c0_7 = arith.constant 0 : index
    %12 = vector.load %arg4[%c0_6, %c0_7] : memref<1x256xf32, #tpu.memory_space<vmem>>, vector<1x256xf32>
    %cst_8 = arith.constant 0.000000e+00 : f32
    %13 = vector.broadcast %cst_8 : f32 to vector<1x256xf32>
    %14 = arith.cmpf one, %12, %13 : vector<1x256xf32>
    %15 = vector.shape_cast %14 : vector<1x256xi1> to vector<1x256xi1>
    %16 = vector.broadcast %15 : vector<1x256xi1> to vector<128x256xi1>
    %17 = arith.select %16, %11, %6 : vector<128x256xi1>, vector<128x256xf32>
    %c0_9 = arith.constant 0 : index
    %c0_10 = arith.constant 0 : index
    %18 = vector.load %arg5[%c0_9, %c0_10] : memref<128x256xf32, #tpu.memory_space<vmem>>, vector<128x256xf32>
    tpu.vector_store %arg5[%c0_9, %c0_10], %17 {strides = array<i32>} : memref<128x256xf32, #tpu.memory_space<vmem>>, vector<128x256xf32>,
    return
  }
  func.func @transform_0(%arg0: i32) -> (i32, i32) {
    %c0_i32 = arith.constant 0 : i32
    %c0_i32_0 = arith.constant 0 : i32
    return %arg0, %c0_i32 : i32, i32
  }
  func.func @transform_1(%arg0: i32) -> (i32, i32) {
    %c0_i32 = arith.constant 0 : i32
    %c0_i32_0 = arith.constant 0 : i32
    %c0_i32_1 = arith.constant 0 : i32
    return %c0_i32, %c0_i32_0 : i32, i32
  }
  func.func @transform_2(%arg0: i32) -> (i32, i32) {
    %c0_i32 = arith.constant 0 : i32
    %c0_i32_0 = arith.constant 0 : i32
    %c0_i32_1 = arith.constant 0 : i32
    return %c0_i32, %c0_i32_0 : i32, i32
  }
  func.func @transform_3(%arg0: i32) -> (i32, i32) {
    %c0_i32 = arith.constant 0 : i32
    %c0_i32_0 = arith.constant 0 : i32
    %c0_i32_1 = arith.constant 0 : i32
    return %c0_i32, %c0_i32_0 : i32, i32
  }
  func.func @transform_4(%arg0: i32) -> (i32, i32) {
    %c0_i32 = arith.constant 0 : i32
    %c0_i32_0 = arith.constant 0 : i32
    return %arg0, %c0_i32 : i32, i32
  }
}

module attributes {stable_mosaic.version = 11 : i64} {
  func.func @_conv_stats_kernel(%arg0: i32, %arg1: memref<128x72xbf16, #tpu.memory_space<vmem>>, %arg2: memref<72x128xbf16, #tpu.memory_space<vmem>>, %arg3: memref<128x128xf32, #tpu.memory_space<vmem>>, %arg4: memref<1x128xf32, #tpu.memory_space<vmem>>, %arg5: memref<1x128xf32, #tpu.memory_space<vmem>>) attributes {dimension_semantics = [#tpu.dimension_semantics<arbitrary>], iteration_bounds = array<i64: 1>, scalar_prefetch = 0 : i64, scratch_operands = 0 : i64, tpu.core_type = #tpu.core_type<tc>, window_params = [{transform_indices = @transform_0, window_bounds = array<i64: 128, 72>}, {pipeline_mode = #tpu.pipeline_mode<synchronous>, transform_indices = @transform_1, window_bounds = array<i64: 72, 128>}, {transform_indices = @transform_2, window_bounds = array<i64: 128, 128>}, {pipeline_mode = #tpu.pipeline_mode<synchronous>, transform_indices = @transform_3, window_bounds = array<i64: 1, 128>}, {pipeline_mode = #tpu.pipeline_mode<synchronous>, transform_indices = @transform_4, window_bounds = array<i64: 1, 128>}]} {
    %c0_i32 = arith.constant 0 : i32
    %0 = arith.cmpi eq, %arg0, %c0_i32 : i32
    %1 = arith.extui %0 : i1 to i32
    %c0_i32_0 = arith.constant 0 : i32
    %2 = arith.cmpi ne, %1, %c0_i32_0 : i32
    scf.if %2 {
      %cst_16 = arith.constant 0.000000e+00 : f32
      %18 = vector.broadcast %cst_16 : f32 to vector<1x128xf32>
      %c0_17 = arith.constant 0 : index
      %c0_18 = arith.constant 0 : index
      %19 = vector.load %arg4[%c0_17, %c0_18] : memref<1x128xf32, #tpu.memory_space<vmem>>, vector<1x128xf32>
      tpu.vector_store %arg4[%c0_17, %c0_18], %18 {strides = array<i32>} : memref<1x128xf32, #tpu.memory_space<vmem>>, vector<1x128xf32>,
      %cst_19 = arith.constant 0.000000e+00 : f32
      %20 = vector.broadcast %cst_19 : f32 to vector<1x128xf32>
      %c0_20 = arith.constant 0 : index
      %c0_21 = arith.constant 0 : index
      %21 = vector.load %arg5[%c0_20, %c0_21] : memref<1x128xf32, #tpu.memory_space<vmem>>, vector<1x128xf32>
      tpu.vector_store %arg5[%c0_20, %c0_21], %20 {strides = array<i32>} : memref<1x128xf32, #tpu.memory_space<vmem>>, vector<1x128xf32>,
    } else {
    }
    %c0 = arith.constant 0 : index
    %c0_1 = arith.constant 0 : index
    %3 = vector.load %arg1[%c0, %c0_1] : memref<128x72xbf16, #tpu.memory_space<vmem>>, vector<128x72xbf16>
    %c0_2 = arith.constant 0 : index
    %c0_3 = arith.constant 0 : index
    %4 = vector.load %arg2[%c0_2, %c0_3] : memref<72x128xbf16, #tpu.memory_space<vmem>>, vector<72x128xbf16>
    %cst = arith.constant dense<0.000000e+00> : vector<128x128xf32>
    %5 = tpu.matmul %3, %4, %cst {dimension_numbers = #tpu.dot_dimension_numbers<[1], [0], [0], [1], [0, 0, 1, 1], [], []>} : vector<128x72xbf16>, vector<72x128xbf16>, vector<128x128xf32> -> vector<128x128xf32>
    %c0_4 = arith.constant 0 : index
    %c0_5 = arith.constant 0 : index
    %6 = vector.load %arg3[%c0_4, %c0_5] : memref<128x128xf32, #tpu.memory_space<vmem>>, vector<128x128xf32>
    tpu.vector_store %arg3[%c0_4, %c0_5], %5 {strides = array<i32>} : memref<128x128xf32, #tpu.memory_space<vmem>>, vector<128x128xf32>,
    %c0_6 = arith.constant 0 : index
    %c0_7 = arith.constant 0 : index
    %7 = vector.load %arg4[%c0_6, %c0_7] : memref<1x128xf32, #tpu.memory_space<vmem>>, vector<1x128xf32>
    %cst_8 = arith.constant dense<0.000000e+00> : vector<128xf32>
    %8 = vector.multi_reduction <add>, %5, %cst_8 [0] : vector<128x128xf32> to vector<128xf32>
    %9 = vector.shape_cast %8 : vector<128xf32> to vector<1x128xf32>
    %10 = arith.addf %7, %9 : vector<1x128xf32>
    %c0_9 = arith.constant 0 : index
    %c0_10 = arith.constant 0 : index
    %11 = vector.load %arg4[%c0_9, %c0_10] : memref<1x128xf32, #tpu.memory_space<vmem>>, vector<1x128xf32>
    tpu.vector_store %arg4[%c0_9, %c0_10], %10 {strides = array<i32>} : memref<1x128xf32, #tpu.memory_space<vmem>>, vector<1x128xf32>,
    %c0_11 = arith.constant 0 : index
    %c0_12 = arith.constant 0 : index
    %12 = vector.load %arg5[%c0_11, %c0_12] : memref<1x128xf32, #tpu.memory_space<vmem>>, vector<1x128xf32>
    %13 = arith.mulf %5, %5 : vector<128x128xf32>
    %cst_13 = arith.constant dense<0.000000e+00> : vector<128xf32>
    %14 = vector.multi_reduction <add>, %13, %cst_13 [0] : vector<128x128xf32> to vector<128xf32>
    %15 = vector.shape_cast %14 : vector<128xf32> to vector<1x128xf32>
    %16 = arith.addf %12, %15 : vector<1x128xf32>
    %c0_14 = arith.constant 0 : index
    %c0_15 = arith.constant 0 : index
    %17 = vector.load %arg5[%c0_14, %c0_15] : memref<1x128xf32, #tpu.memory_space<vmem>>, vector<1x128xf32>
    tpu.vector_store %arg5[%c0_14, %c0_15], %16 {strides = array<i32>} : memref<1x128xf32, #tpu.memory_space<vmem>>, vector<1x128xf32>,
    return
  }
  func.func @transform_0(%arg0: i32) -> (i32, i32) {
    %c0_i32 = arith.constant 0 : i32
    %c0_i32_0 = arith.constant 0 : i32
    return %arg0, %c0_i32 : i32, i32
  }
  func.func @transform_1(%arg0: i32) -> (i32, i32) {
    %c0_i32 = arith.constant 0 : i32
    %c0_i32_0 = arith.constant 0 : i32
    %c0_i32_1 = arith.constant 0 : i32
    return %c0_i32, %c0_i32_0 : i32, i32
  }
  func.func @transform_2(%arg0: i32) -> (i32, i32) {
    %c0_i32 = arith.constant 0 : i32
    %c0_i32_0 = arith.constant 0 : i32
    return %arg0, %c0_i32 : i32, i32
  }
  func.func @transform_3(%arg0: i32) -> (i32, i32) {
    %c0_i32 = arith.constant 0 : i32
    %c0_i32_0 = arith.constant 0 : i32
    %c0_i32_1 = arith.constant 0 : i32
    return %c0_i32, %c0_i32_0 : i32, i32
  }
  func.func @transform_4(%arg0: i32) -> (i32, i32) {
    %c0_i32 = arith.constant 0 : i32
    %c0_i32_0 = arith.constant 0 : i32
    %c0_i32_1 = arith.constant 0 : i32
    return %c0_i32, %c0_i32_0 : i32, i32
  }
}

module attributes {stable_mosaic.version = 11 : i64} {
  func.func @_norm_res_act_kernel(%arg0: i32, %arg1: memref<128x128xf32, #tpu.memory_space<vmem>>, %arg2: memref<1x128xf32, #tpu.memory_space<vmem>>, %arg3: memref<1x128xf32, #tpu.memory_space<vmem>>, %arg4: memref<128x128xf32, #tpu.memory_space<vmem>>, %arg5: memref<128x128xf32, #tpu.memory_space<vmem>>) attributes {dimension_semantics = [#tpu.dimension_semantics<parallel>], iteration_bounds = array<i64: 1>, scalar_prefetch = 0 : i64, scratch_operands = 0 : i64, tpu.core_type = #tpu.core_type<tc>, window_params = [{transform_indices = @transform_0, window_bounds = array<i64: 128, 128>}, {pipeline_mode = #tpu.pipeline_mode<synchronous>, transform_indices = @transform_1, window_bounds = array<i64: 1, 128>}, {pipeline_mode = #tpu.pipeline_mode<synchronous>, transform_indices = @transform_2, window_bounds = array<i64: 1, 128>}, {transform_indices = @transform_3, window_bounds = array<i64: 128, 128>}, {transform_indices = @transform_4, window_bounds = array<i64: 128, 128>}]} {
    %c0 = arith.constant 0 : index
    %c0_0 = arith.constant 0 : index
    %0 = vector.load %arg1[%c0, %c0_0] : memref<128x128xf32, #tpu.memory_space<vmem>>, vector<128x128xf32>
    %c0_1 = arith.constant 0 : index
    %c0_2 = arith.constant 0 : index
    %1 = vector.load %arg2[%c0_1, %c0_2] : memref<1x128xf32, #tpu.memory_space<vmem>>, vector<1x128xf32>
    %2 = vector.broadcast %1 : vector<1x128xf32> to vector<128x128xf32>
    %3 = arith.mulf %0, %2 : vector<128x128xf32>
    %c0_3 = arith.constant 0 : index
    %c0_4 = arith.constant 0 : index
    %4 = vector.load %arg3[%c0_3, %c0_4] : memref<1x128xf32, #tpu.memory_space<vmem>>, vector<1x128xf32>
    %5 = vector.broadcast %4 : vector<1x128xf32> to vector<128x128xf32>
    %6 = arith.addf %3, %5 : vector<128x128xf32>
    %c0_5 = arith.constant 0 : index
    %c0_6 = arith.constant 0 : index
    %7 = vector.load %arg4[%c0_5, %c0_6] : memref<128x128xf32, #tpu.memory_space<vmem>>, vector<128x128xf32>
    %8 = arith.addf %6, %7 : vector<128x128xf32>
    %cst = arith.constant 0.000000e+00 : f32
    %9 = vector.broadcast %cst : f32 to vector<128x128xf32>
    %10 = arith.cmpf oge, %8, %9 : vector<128x128xf32>
    %cst_7 = arith.constant 2.000000e-01 : f32
    %11 = vector.broadcast %cst_7 : f32 to vector<128x128xf32>
    %12 = arith.mulf %11, %8 : vector<128x128xf32>
    %13 = arith.select %10, %8, %12 : vector<128x128xi1>, vector<128x128xf32>
    %c0_8 = arith.constant 0 : index
    %c0_9 = arith.constant 0 : index
    %14 = vector.load %arg5[%c0_8, %c0_9] : memref<128x128xf32, #tpu.memory_space<vmem>>, vector<128x128xf32>
    tpu.vector_store %arg5[%c0_8, %c0_9], %13 {strides = array<i32>} : memref<128x128xf32, #tpu.memory_space<vmem>>, vector<128x128xf32>,
    return
  }
  func.func @transform_0(%arg0: i32) -> (i32, i32) {
    %c0_i32 = arith.constant 0 : i32
    %c0_i32_0 = arith.constant 0 : i32
    return %arg0, %c0_i32 : i32, i32
  }
  func.func @transform_1(%arg0: i32) -> (i32, i32) {
    %c0_i32 = arith.constant 0 : i32
    %c0_i32_0 = arith.constant 0 : i32
    %c0_i32_1 = arith.constant 0 : i32
    return %c0_i32, %c0_i32_0 : i32, i32
  }
  func.func @transform_2(%arg0: i32) -> (i32, i32) {
    %c0_i32 = arith.constant 0 : i32
    %c0_i32_0 = arith.constant 0 : i32
    %c0_i32_1 = arith.constant 0 : i32
    return %c0_i32, %c0_i32_0 : i32, i32
  }
  func.func @transform_3(%arg0: i32) -> (i32, i32) {
    %c0_i32 = arith.constant 0 : i32
    %c0_i32_0 = arith.constant 0 : i32
    return %arg0, %c0_i32 : i32, i32
  }
  func.func @transform_4(%arg0: i32) -> (i32, i32) {
    %c0_i32 = arith.constant 0 : i32
    %c0_i32_0 = arith.constant 0 : i32
    return %arg0, %c0_i32 : i32, i32
  }
}

module attributes {stable_mosaic.version = 11 : i64} {
  func.func @_norm_act_kernel(%arg0: i32, %arg1: memref<128x128xf32, #tpu.memory_space<vmem>>, %arg2: memref<1x128xf32, #tpu.memory_space<vmem>>, %arg3: memref<1x128xf32, #tpu.memory_space<vmem>>, %arg4: memref<1x128xf32, #tpu.memory_space<vmem>>, %arg5: memref<128x128xf32, #tpu.memory_space<vmem>>) attributes {dimension_semantics = [#tpu.dimension_semantics<parallel>], iteration_bounds = array<i64: 1>, scalar_prefetch = 0 : i64, scratch_operands = 0 : i64, tpu.core_type = #tpu.core_type<tc>, window_params = [{transform_indices = @transform_0, window_bounds = array<i64: 128, 128>}, {pipeline_mode = #tpu.pipeline_mode<synchronous>, transform_indices = @transform_1, window_bounds = array<i64: 1, 128>}, {pipeline_mode = #tpu.pipeline_mode<synchronous>, transform_indices = @transform_2, window_bounds = array<i64: 1, 128>}, {pipeline_mode = #tpu.pipeline_mode<synchronous>, transform_indices = @transform_3, window_bounds = array<i64: 1, 128>}, {transform_indices = @transform_4, window_bounds = array<i64: 128, 128>}]} {
    %c0 = arith.constant 0 : index
    %c0_0 = arith.constant 0 : index
    %0 = vector.load %arg1[%c0, %c0_0] : memref<128x128xf32, #tpu.memory_space<vmem>>, vector<128x128xf32>
    %c0_1 = arith.constant 0 : index
    %c0_2 = arith.constant 0 : index
    %1 = vector.load %arg2[%c0_1, %c0_2] : memref<1x128xf32, #tpu.memory_space<vmem>>, vector<1x128xf32>
    %2 = vector.broadcast %1 : vector<1x128xf32> to vector<128x128xf32>
    %3 = arith.mulf %0, %2 : vector<128x128xf32>
    %c0_3 = arith.constant 0 : index
    %c0_4 = arith.constant 0 : index
    %4 = vector.load %arg3[%c0_3, %c0_4] : memref<1x128xf32, #tpu.memory_space<vmem>>, vector<1x128xf32>
    %5 = vector.broadcast %4 : vector<1x128xf32> to vector<128x128xf32>
    %6 = arith.addf %3, %5 : vector<128x128xf32>
    %cst = arith.constant 0.000000e+00 : f32
    %7 = vector.broadcast %cst : f32 to vector<128x128xf32>
    %8 = arith.cmpf oge, %6, %7 : vector<128x128xf32>
    %cst_5 = arith.constant 2.000000e-01 : f32
    %9 = vector.broadcast %cst_5 : f32 to vector<128x128xf32>
    %10 = arith.mulf %9, %6 : vector<128x128xf32>
    %11 = arith.select %8, %6, %10 : vector<128x128xi1>, vector<128x128xf32>
    %c0_6 = arith.constant 0 : index
    %c0_7 = arith.constant 0 : index
    %12 = vector.load %arg4[%c0_6, %c0_7] : memref<1x128xf32, #tpu.memory_space<vmem>>, vector<1x128xf32>
    %cst_8 = arith.constant 0.000000e+00 : f32
    %13 = vector.broadcast %cst_8 : f32 to vector<1x128xf32>
    %14 = arith.cmpf one, %12, %13 : vector<1x128xf32>
    %15 = vector.shape_cast %14 : vector<1x128xi1> to vector<1x128xi1>
    %16 = vector.broadcast %15 : vector<1x128xi1> to vector<128x128xi1>
    %17 = arith.select %16, %11, %6 : vector<128x128xi1>, vector<128x128xf32>
    %c0_9 = arith.constant 0 : index
    %c0_10 = arith.constant 0 : index
    %18 = vector.load %arg5[%c0_9, %c0_10] : memref<128x128xf32, #tpu.memory_space<vmem>>, vector<128x128xf32>
    tpu.vector_store %arg5[%c0_9, %c0_10], %17 {strides = array<i32>} : memref<128x128xf32, #tpu.memory_space<vmem>>, vector<128x128xf32>,
    return
  }
  func.func @transform_0(%arg0: i32) -> (i32, i32) {
    %c0_i32 = arith.constant 0 : i32
    %c0_i32_0 = arith.constant 0 : i32
    return %arg0, %c0_i32 : i32, i32
  }
  func.func @transform_1(%arg0: i32) -> (i32, i32) {
    %c0_i32 = arith.constant 0 : i32
    %c0_i32_0 = arith.constant 0 : i32
    %c0_i32_1 = arith.constant 0 : i32
    return %c0_i32, %c0_i32_0 : i32, i32
  }
  func.func @transform_2(%arg0: i32) -> (i32, i32) {
    %c0_i32 = arith.constant 0 : i32
    %c0_i32_0 = arith.constant 0 : i32
    %c0_i32_1 = arith.constant 0 : i32
    return %c0_i32, %c0_i32_0 : i32, i32
  }
  func.func @transform_3(%arg0: i32) -> (i32, i32) {
    %c0_i32 = arith.constant 0 : i32
    %c0_i32_0 = arith.constant 0 : i32
    %c0_i32_1 = arith.constant 0 : i32
    return %c0_i32, %c0_i32_0 : i32, i32
  }
  func.func @transform_4(%arg0: i32) -> (i32, i32) {
    %c0_i32 = arith.constant 0 : i32
    %c0_i32_0 = arith.constant 0 : i32
    return %arg0, %c0_i32 : i32, i32
  }
}

</mosaic_0001>

<bundles_post_ra>
// kernel: res_down_forward.9
= control target key start
LH: loop header
LB: loop body
LE: loop exit
PB: predicated region body
PF: predicated region fallthrough
CT: control target
= control target key end

     0   :  { %v51_v0 = vlaneseq  ;;  %v315_v6 = vmov 0   ;;  %s686_s1 = inlined_call_operand.vmem [shape: f32[1,256], index: 1, kind: input, shape index: {}]   ;;  %s687_s2 = inlined_call_operand.vmem [shape: f32[1,256], index: 2, kind: input, shape index: {}]   ;;  %s688_s3 = inlined_call_operand.vmem [shape: f32[1,256], index: 3, kind: input, shape index: {}]   ;;  %s689_s0 = inlined_call_operand.vmem [shape: f32[128,256], index: 0, kind: input, shape index: {}]   ;;  %s690_s4 = inlined_call_operand.vmem [shape: f32[128,256], index: 4, kind: output, shape index: {}]  }
   0x1   :  { %v233_v2 = vld [vmem:[%s688_s3] sm:$0x3]  ;;  %v18_v10 = vld [vmem:[%s689_s0 + $0x8] sm:$0xff]  ;;  %v19_v11 = vld [vmem:[%s689_s0 + $0x10] sm:$0xff] }
   0x2   :  { %v52_v1 = vshrl.u32 %v51_v0, 7  ;;  %v49_v3 = vld [vmem:[%s686_s1] sm:$0x3]  ;;  %vm234_vm0 = vcmp.ne.f32.partialorder %v233_v2, 0.0  ;;  %v20_v16 = vld [vmem:[%s689_s0 + $0x18] sm:$0xff]  ;;  %v22_v18 = vld [vmem:[%s689_s0 + $0x28] sm:$0xff] }
   0x3   :  { %v93_v4 = vld [vmem:[%s687_s2] sm:$0x3]  ;;  %v235_v7 = vsel %vm234_vm0, 1, %v315_v6  ;;  %v23_v21 = vld [vmem:[%s689_s0 + $0x30] sm:$0xff]  ;;  %v24_v26 = vld [vmem:[%s689_s0 + $0x38] sm:$0xff] }
   0x4   :  { %v53_v5 = vsub.s32 0, %v52_v1  ;;  %v57_v8 = vsub.s32 1, %v52_v1  ;;  %v17_v9 = vld [vmem:[%s689_s0] sm:$0xff]  ;;  %v26_v51 = vld [vmem:[%s689_s0 + $0x48] sm:$0xff]  ;;  %v27_v52 = vld [vmem:[%s689_s0 + $0x50] sm:$0xff] }
   0x5   :  { %v21_v17 = vld [vmem:[%s689_s0 + $0x20] sm:$0xff]  ;;  %v28_v53 = vld [vmem:[%s689_s0 + $0x58] sm:$0xff] }
   0x6   :  { %v359_v12 = vrot.slane %v49_v3, %v53_v5  ;;  %v361_v13 = vrot.slane %v93_v4, %v53_v5  ;;  %v239_v14 = vrot.slane %v235_v7, %v53_v5  ;;  %v363_v15 = vrot.slane %v49_v3, %v57_v8  ;;  %v25_v46 = vld [vmem:[%s689_s0 + $0x40] sm:$0xff] }
   0x7   :  { %v374_v19 = vrot.slane %v93_v4, %v57_v8  ;;  %v243_v20 = vrot.slane %v235_v7, %v57_v8  ;;  %v29_v1 = vld [vmem:[%s689_s0 + $0x60] sm:$0xff] }
   0x8   :  { %v61_v22 = vmul.f32 %v359_v12, %v17_v9  ;;  %vm380_vm1 = vcmp.eq.s32.totalorder %v239_v14, 1  ;;  %v62_v24 = vmul.f32 %v363_v15, %v18_v10  ;;  %v63_v25 = vmul.f32 %v359_v12, %v19_v11 }
   0x9   :  { %vm389_vm2 = vcmp.eq.s32.totalorder %v243_v20, 1  ;;  %v64_v28 = vmul.f32 %v363_v15, %v20_v16  ;;  %v65_v29 = vmul.f32 %v359_v12, %v21_v17  ;;  %v66_v30 = vmul.f32 %v363_v15, %v22_v18  ;;  %v30_v18 = vld [vmem:[%s689_s0 + $0x68] sm:$0xff] }
   0xa   :  { %v105_v31 = vadd.f32 %v361_v13, %v61_v22  ;;  %v106_v32 = vadd.f32 %v374_v19, %v62_v24  ;;  %v107_v33 = vadd.f32 %v361_v13, %v63_v25  ;;  %v67_v34 = vmul.f32 %v359_v12, %v23_v21  ;;  %v31_v22 = vld [vmem:[%s689_s0 + $0x70] sm:$0xff] }
   0xb   :  { %v108_v35 = vadd.f32 %v374_v19, %v64_v28  ;;  %v109_v36 = vadd.f32 %v361_v13, %v65_v29  ;;  %v110_v37 = vadd.f32 %v374_v19, %v66_v30  ;;  %v68_v38 = vmul.f32 %v363_v15, %v24_v26 }
   0xc   :  { %vm137_vm3 = vcmp.ge.f32.partialorder %v105_v31, 0.0  ;;  %v169_v39 = vmul.f32 0.2, %v105_v31  ;;  %vm138_vm4 = vcmp.ge.f32.partialorder %v106_v32, 0.0  ;;  %v170_v40 = vmul.f32 0.2, %v106_v32 }
   0xd   :  { %vm139_vm5 = vcmp.ge.f32.partialorder %v107_v33, 0.0  ;;  %v171_v41 = vmul.f32 0.2, %v107_v33  ;;  %vm140_vm6 = vcmp.ge.f32.partialorder %v108_v35, 0.0  ;;  %v172_v42 = vmul.f32 0.2, %v108_v35 }
   0xe   :  { %v201_v43 = vsel %vm137_vm3, %v105_v31, %v169_v39  ;;  %v202_v44 = vsel %vm138_vm4, %v106_v32, %v170_v40  ;;  %vm141_vm7 = vcmp.ge.f32.partialorder %v109_v36, 0.0  ;;  %v173_v45 = vmul.f32 0.2, %v109_v36  ;;  %v35_v39 = vld [vmem:[%s689_s0 + $0x90] sm:$0xff]  ;;  %v36_v40 = vld [vmem:[%s689_s0 + $0x98] sm:$0xff] }
   0xf   :  { %v246_v47 = vsel %vm380_vm1, %v201_v43, %v105_v31  ;;  %v247_v48 = vsel %vm389_vm2, %v202_v44, %v106_v32  ;;  %v203_v49 = vsel %vm139_vm5, %v107_v33, %v171_v41  ;;  %v204_v50 = vsel %vm140_vm6, %v108_v35, %v172_v42  ;;  %v32_v32 = vld [vmem:[%s689_s0 + $0x78] sm:$0xff] }
  0x10   :  { %278 = vst [vmem:[%s690_s4] sm:$0xff] %v246_v47  ;;  %279 = vst [vmem:[%s690_s4 + $0x8] sm:$0xff] %v247_v48  ;;  %v248_v54 = vsel %vm380_vm1, %v203_v49, %v107_v33  ;;  %v249_v55 = vsel %vm389_vm2, %v204_v50, %v108_v35  ;;  %v205_v56 = vsel %vm141_vm7, %v109_v36, %v173_v45  ;;  %vm142_vm8 = vcmp.ge.f32.partialorder %v110_v37, 0.0  ;;  %v33_v33 = vld [vmem:[%s689_s0 + $0x80] sm:$0xff] }
  0x11   :  { %280 = vst [vmem:[%s690_s4 + $0x10] sm:$0xff] %v248_v54  ;;  %281 = vst [vmem:[%s690_s4 + $0x18] sm:$0xff] %v249_v55  ;;  %v250_v57 = vsel %vm380_vm1, %v205_v56, %v109_v36  ;;  %v174_v58 = vmul.f32 0.2, %v110_v37  ;;  %v111_v59 = vadd.f32 %v361_v13, %v67_v34  ;;  %v112_v60 = vadd.f32 %v374_v19, %v68_v38  ;;  %v34_v38 = vld [vmem:[%s689_s0 + $0x88] sm:$0xff] }
  0x12   :  { %282 = vst [vmem:[%s690_s4 + $0x20] sm:$0xff] %v250_v57  ;;  %v69_v61 = vmul.f32 %v359_v12, %v25_v46  ;;  %v70_v62 = vmul.f32 %v363_v15, %v26_v51  ;;  %v71_v63 = vmul.f32 %v359_v12, %v27_v52  ;;  %v72_v0 = vmul.f32 %v363_v15, %v28_v53  ;;  %v37_v52 = vld [vmem:[%s689_s0 + $0xa0] sm:$0xff] }
  0x13   :  { %v206_v2 = vsel %vm142_vm8, %v110_v37, %v174_v58  ;;  %vm143_vm9 = vcmp.ge.f32.partialorder %v111_v59, 0.0  ;;  %v175_v3 = vmul.f32 0.2, %v111_v59  ;;  %vm144_vm10 = vcmp.ge.f32.partialorder %v112_v60, 0.0 }
  0x14   :  { %v251_v4 = vsel %vm389_vm2, %v206_v2, %v110_v37  ;;  %v176_v5 = vmul.f32 0.2, %v112_v60  ;;  %v113_v6 = vadd.f32 %v361_v13, %v69_v61  ;;  %v114_v7 = vadd.f32 %v374_v19, %v70_v62 }
  0x15   :  { %283 = vst [vmem:[%s690_s4 + $0x28] sm:$0xff] %v251_v4  ;;  %v207_v8 = vsel %vm143_vm9, %v111_v59, %v175_v3  ;;  %v115_v9 = vadd.f32 %v361_v13, %v71_v63  ;;  %v116_v10 = vadd.f32 %v374_v19, %v72_v0  ;;  %v73_v11 = vmul.f32 %v359_v12, %v29_v1 }
  0x16   :  { %v252_v14 = vsel %vm380_vm1, %v207_v8, %v111_v59  ;;  %v208_v16 = vsel %vm144_vm10, %v112_v60, %v176_v5  ;;  %vm145_vm11 = vcmp.ge.f32.partialorder %v113_v6, 0.0  ;;  %v177_v17 = vmul.f32 0.2, %v113_v6 }
  0x17   :  { %284 = vst [vmem:[%s690_s4 + $0x30] sm:$0xff] %v252_v14  ;;  %v253_v20 = vsel %vm389_vm2, %v208_v16, %v112_v60  ;;  %vm146_vm12 = vcmp.ge.f32.partialorder %v114_v7, 0.0  ;;  %v178_v21 = vmul.f32 0.2, %v114_v7  ;;  %vm147_vm13 = vcmp.ge.f32.partialorder %v115_v9, 0.0 }
  0x18   :  { %285 = vst [vmem:[%s690_s4 + $0x38] sm:$0xff] %v253_v20  ;;  %v209_v24 = vsel %vm145_vm11, %v113_v6, %v177_v17  ;;  %v179_v25 = vmul.f32 0.2, %v115_v9  ;;  %vm148_vm14 = vcmp.ge.f32.partialorder %v116_v10, 0.0  ;;  %v180_v26 = vmul.f32 0.2, %v116_v10 }
  0x19   :  { %v254_v28 = vsel %vm380_vm1, %v209_v24, %v113_v6  ;;  %v210_v29 = vsel %vm146_vm12, %v114_v7, %v178_v21  ;;  %v117_v30 = vadd.f32 %v361_v13, %v73_v11  ;;  %v74_v31 = vmul.f32 %v363_v15, %v30_v18  ;;  %v39_v11 = vld [vmem:[%s689_s0 + $0xb0] sm:$0xff]  ;;  %v40_v20 = vld [vmem:[%s689_s0 + $0xb8] sm:$0xff]  ;;  %v41_v21 = vld [vmem:[%s689_s0 + $0xc0] sm:$0xff] }
  0x1a   :  { %286 = vst [vmem:[%s690_s4 + $0x40] sm:$0xff] %v254_v28  ;;  %v255_v34 = vsel %vm389_vm2, %v210_v29, %v114_v7  ;;  %v211_v35 = vsel %vm147_vm13, %v115_v9, %v179_v25  ;;  %v212_v36 = vsel %vm148_vm14, %v116_v10, %v180_v26  ;;  %v75_v37 = vmul.f32 %v359_v12, %v31_v22  ;;  %v38_v7 = vld [vmem:[%s689_s0 + $0xa8] sm:$0xff]  ;;  %v43_v29 = vld [vmem:[%s689_s0 + $0xd0] sm:$0xff] }
  0x1b   :  { %287 = vst [vmem:[%s690_s4 + $0x48] sm:$0xff] %v255_v34  ;;  %v256_v41 = vsel %vm380_vm1, %v211_v35, %v115_v9  ;;  %v257_v42 = vsel %vm389_vm2, %v212_v36, %v116_v10  ;;  %vm149_vm15 = vcmp.ge.f32.partialorder %v117_v30, 0.0  ;;  %v181_v43 = vmul.f32 0.2, %v117_v30  ;;  %v42_v22 = vld [vmem:[%s689_s0 + $0xc8] sm:$0xff] }
  0x1c   :  { %288 = vst [vmem:[%s690_s4 + $0x50] sm:$0xff] %v256_v41  ;;  %289 = vst [vmem:[%s690_s4 + $0x58] sm:$0xff] %v257_v42  ;;  %v118_v44 = vadd.f32 %v374_v19, %v74_v31  ;;  %v119_v45 = vadd.f32 %v361_v13, %v75_v37  ;;  %v76_v46 = vmul.f32 %v363_v15, %v32_v32 }
  0x1d   :  { %v77_v47 = vmul.f32 %v359_v12, %v33_v33  ;;  %v213_v48 = vsel %vm149_vm15, %v117_v30, %v181_v43  ;;  %v78_v49 = vmul.f32 %v363_v15, %v34_v38  ;;  %v79_v50 = vmul.f32 %v359_v12, %v35_v39 }
  0x1e   :  { %v80_v51 = vmul.f32 %v363_v15, %v36_v40  ;;  %v258_v53 = vsel %vm380_vm1, %v213_v48, %v117_v30  ;;  %vm150_vm0 = vcmp.ge.f32.partialorder %v118_v44, 0.0  ;;  %v182_v54 = vmul.f32 0.2, %v118_v44  ;;  %v44_v30 = vld [vmem:[%s689_s0 + $0xd8] sm:$0xff] }
  0x1f   :  { %vm151_vm3 = vcmp.ge.f32.partialorder %v119_v45, 0.0  ;;  %290 = vst [vmem:[%s690_s4 + $0x60] sm:$0xff] %v258_v53  ;;  %v183_v55 = vmul.f32 0.2, %v119_v45  ;;  %v120_v56 = vadd.f32 %v374_v19, %v76_v46  ;;  %v121_v57 = vadd.f32 %v361_v13, %v77_v47 }
  0x20   :  { %v122_v58 = vadd.f32 %v374_v19, %v78_v49  ;;  %v214_v59 = vsel %vm150_vm0, %v118_v44, %v182_v54  ;;  %v123_v60 = vadd.f32 %v361_v13, %v79_v50  ;;  %v124_v61 = vadd.f32 %v374_v19, %v80_v51  ;;  %v45_v54 = vld [vmem:[%s689_s0 + $0xe0] sm:$0xff] }
  0x21   :  { %v81_v62 = vmul.f32 %v359_v12, %v37_v52  ;;  %v259_v63 = vsel %vm389_vm2, %v214_v59, %v118_v44  ;;  %v215_v0 = vsel %vm151_vm3, %v119_v45, %v183_v55  ;;  %vm152_vm4 = vcmp.ge.f32.partialorder %v120_v56, 0.0  ;;  %v47_v59 = vld [vmem:[%s689_s0 + $0xf0] sm:$0xff] }
  0x22   :  { %v184_v1 = vmul.f32 0.2, %v120_v56  ;;  %291 = vst [vmem:[%s690_s4 + $0x68] sm:$0xff] %v259_v63  ;;  %v260_v2 = vsel %vm380_vm1, %v215_v0, %v119_v45  ;;  %vm153_vm5 = vcmp.ge.f32.partialorder %v121_v57, 0.0  ;;  %v185_v3 = vmul.f32 0.2, %v121_v57 }
  0x23   :  { %vm154_vm6 = vcmp.ge.f32.partialorder %v122_v58, 0.0  ;;  %292 = vst [vmem:[%s690_s4 + $0x70] sm:$0xff] %v260_v2  ;;  %v186_v5 = vmul.f32 0.2, %v122_v58  ;;  %vm155_vm7 = vcmp.ge.f32.partialorder %v123_v60, 0.0  ;;  %vm156_vm8 = vcmp.ge.f32.partialorder %v124_v61, 0.0 }
  0x24   :  { %v216_v4 = vsel %vm152_vm4, %v120_v56, %v184_v1  ;;  %v187_v6 = vmul.f32 0.2, %v123_v60  ;;  %v217_v9 = vsel %vm153_vm5, %v121_v57, %v185_v3  ;;  %v188_v10 = vmul.f32 0.2, %v124_v61  ;;  %v48_v3 = vld [vmem:[%s689_s0 + $0xf8] sm:$0xff] }
  0x25   :  { %v261_v8 = vsel %vm389_vm2, %v216_v4, %v120_v56  ;;  %v262_v14 = vsel %vm380_vm1, %v217_v9, %v121_v57  ;;  %v218_v16 = vsel %vm154_vm6, %v122_v58, %v186_v5  ;;  %v125_v18 = vadd.f32 %v361_v13, %v81_v62 }
  0x26   :  { %293 = vst [vmem:[%s690_s4 + $0x78] sm:$0xff] %v261_v8  ;;  %v219_v17 = vsel %vm155_vm7, %v123_v60, %v187_v6  ;;  %294 = vst [vmem:[%s690_s4 + $0x80] sm:$0xff] %v262_v14  ;;  %v263_v24 = vsel %vm389_vm2, %v218_v16, %v122_v58  ;;  %v220_v26 = vsel %vm156_vm8, %v124_v61, %v188_v10  ;;  %v46_v58 = vld [vmem:[%s689_s0 + $0xe8] sm:$0xff] }
  0x27   :  { %v264_v25 = vsel %vm380_vm1, %v219_v17, %v123_v60  ;;  %v82_v28 = vmul.f32 %v363_v15, %v38_v7  ;;  %295 = vst [vmem:[%s690_s4 + $0x88] sm:$0xff] %v263_v24  ;;  %v265_v31 = vsel %vm389_vm2, %v220_v26, %v124_v61  ;;  %vm157_vm9 = vcmp.ge.f32.partialorder %v125_v18, 0.0 }
  0x28   :  { %296 = vst [vmem:[%s690_s4 + $0x90] sm:$0xff] %v264_v25  ;;  %v189_v32 = vmul.f32 0.2, %v125_v18  ;;  %v83_v33 = vmul.f32 %v359_v12, %v39_v11  ;;  %297 = vst [vmem:[%s690_s4 + $0x98] sm:$0xff] %v265_v31  ;;  %v84_v35 = vmul.f32 %v363_v15, %v40_v20  ;;  %v85_v36 = vmul.f32 %v359_v12, %v41_v21 }
  0x29   :  { %v126_v34 = vadd.f32 %v374_v19, %v82_v28  ;;  %v86_v37 = vmul.f32 %v363_v15, %v42_v22  ;;  %v87_v40 = vmul.f32 %v359_v12, %v43_v29  ;;  %v88_v41 = vmul.f32 %v363_v15, %v44_v30 }
  0x2a   :  { %v221_v38 = vsel %vm157_vm9, %v125_v18, %v189_v32  ;;  %v127_v39 = vadd.f32 %v361_v13, %v83_v33  ;;  %v128_v44 = vadd.f32 %v374_v19, %v84_v35  ;;  %v129_v46 = vadd.f32 %v361_v13, %v85_v36 }
  0x2b   :  { %v266_v42 = vsel %vm380_vm1, %v221_v38, %v125_v18  ;;  %vm158_vm10 = vcmp.ge.f32.partialorder %v126_v34, 0.0  ;;  %v190_v43 = vmul.f32 0.2, %v126_v34  ;;  %v130_v47 = vadd.f32 %v374_v19, %v86_v37 }
  0x2c   :  { %298 = vst [vmem:[%s690_s4 + $0xa0] sm:$0xff] %v266_v42  ;;  %vm159_vm11 = vcmp.ge.f32.partialorder %v127_v39, 0.0  ;;  %v191_v45 = vmul.f32 0.2, %v127_v39  ;;  %vm160_vm12 = vcmp.ge.f32.partialorder %v128_v44, 0.0  ;;  %v131_v50 = vadd.f32 %v361_v13, %v87_v40 }
  0x2d   :  { %v222_v48 = vsel %vm158_vm10, %v126_v34, %v190_v43  ;;  %v192_v49 = vmul.f32 0.2, %v128_v44  ;;  %vm161_vm13 = vcmp.ge.f32.partialorder %v129_v46, 0.0  ;;  %v193_v53 = vmul.f32 0.2, %v129_v46 }
  0x2e   :  { %v267_v51 = vsel %vm389_vm2, %v222_v48, %v126_v34  ;;  %v223_v52 = vsel %vm159_vm11, %v127_v39, %v191_v45  ;;  %vm162_vm14 = vcmp.ge.f32.partialorder %v130_v47, 0.0  ;;  %v194_v57 = vmul.f32 0.2, %v130_v47 }
  0x2f   :  { %299 = vst [vmem:[%s690_s4 + $0xa8] sm:$0xff] %v267_v51  ;;  %v268_v55 = vsel %vm380_vm1, %v223_v52, %v127_v39  ;;  %v224_v56 = vsel %vm160_vm12, %v128_v44, %v192_v49  ;;  %v225_v61 = vsel %vm161_vm13, %v129_v46, %v193_v53  ;;  %vm163_vm15 = vcmp.ge.f32.partialorder %v131_v50, 0.0 }
  0x30   :  { %300 = vst [vmem:[%s690_s4 + $0xb0] sm:$0xff] %v268_v55  ;;  %v269_v60 = vsel %vm389_vm2, %v224_v56, %v128_v44  ;;  %v195_v62 = vmul.f32 0.2, %v131_v50  ;;  %v270_v63 = vsel %vm380_vm1, %v225_v61, %v129_v46  ;;  %v226_v0 = vsel %vm162_vm14, %v130_v47, %v194_v57 }
  0x31   :  { %301 = vst [vmem:[%s690_s4 + $0xb8] sm:$0xff] %v269_v60  ;;  %v132_v1 = vadd.f32 %v374_v19, %v88_v41  ;;  %v89_v2 = vmul.f32 %v359_v12, %v45_v54  ;;  %302 = vst [vmem:[%s690_s4 + $0xc0] sm:$0xff] %v270_v63  ;;  %v271_v4 = vsel %vm389_vm2, %v226_v0, %v130_v47 }
  0x32   :  { %v227_v5 = vsel %vm163_vm15, %v131_v50, %v195_v62  ;;  %v90_v6 = vmul.f32 %v363_v15, %v46_v58  ;;  %v91_v7 = vmul.f32 %v359_v12, %v47_v59  ;;  %303 = vst [vmem:[%s690_s4 + $0xc8] sm:$0xff] %v271_v4  ;;  %v92_v12 = vmul.f32 %v363_v15, %v48_v3 }
  0x33   :  { %v272_v8 = vsel %vm380_vm1, %v227_v5, %v131_v50  ;;  %vm164_vm0 = vcmp.ge.f32.partialorder %v132_v1, 0.0  ;;  %v196_v9 = vmul.f32 0.2, %v132_v1  ;;  %v133_v10 = vadd.f32 %v361_v13, %v89_v2 }
  0x34   :  { %304 = vst [vmem:[%s690_s4 + $0xd0] sm:$0xff] %v272_v8  ;;  %v134_v11 = vadd.f32 %v374_v19, %v90_v6  ;;  %v135_v14 = vadd.f32 %v361_v13, %v91_v7  ;;  %v136_v24 = vadd.f32 %v374_v19, %v92_v12 }
  0x35   :  { %v228_v16 = vsel %vm164_vm0, %v132_v1, %v196_v9  ;;  %vm165_vm3 = vcmp.ge.f32.partialorder %v133_v10, 0.0  ;;  %v197_v17 = vmul.f32 0.2, %v133_v10 }
  0x36   :  { %v273_v18 = vsel %vm389_vm2, %v228_v16, %v132_v1  ;;  %vm166_vm4 = vcmp.ge.f32.partialorder %v134_v11, 0.0  ;;  %v198_v20 = vmul.f32 0.2, %v134_v11  ;;  %vm167_vm5 = vcmp.ge.f32.partialorder %v135_v14, 0.0 }
  0x37   :  { %305 = vst [vmem:[%s690_s4 + $0xd8] sm:$0xff] %v273_v18  ;;  %v229_v21 = vsel %vm165_vm3, %v133_v10, %v197_v17  ;;  %v199_v22 = vmul.f32 0.2, %v135_v14  ;;  %vm168_vm6 = vcmp.ge.f32.partialorder %v136_v24, 0.0  ;;  %v200_v28 = vmul.f32 0.2, %v136_v24 }
  0x38   :  { %v274_v13 = vsel %vm380_vm1, %v229_v21, %v133_v10  ;;  %v230_v15 = vsel %vm166_vm4, %v134_v11, %v198_v20 }
  0x39   :  { %306 = vst [vmem:[%s690_s4 + $0xe0] sm:$0xff] %v274_v13  ;;  %v275_v25 = vsel %vm389_vm2, %v230_v15, %v134_v11  ;;  %v231_v26 = vsel %vm167_vm5, %v135_v14, %v199_v22  ;;  %v232_v29 = vsel %vm168_vm6, %v136_v24, %v200_v28 }
  0x3a   :  { %307 = vst [vmem:[%s690_s4 + $0xe8] sm:$0xff] %v275_v25  ;;  %v276_v19 = vsel %vm380_vm1, %v231_v26, %v135_v14  ;;  %v277_v30 = vsel %vm389_vm2, %v232_v29, %v136_v24 }
  0x3b   :  { %308 = vst [vmem:[%s690_s4 + $0xf0] sm:$0xff] %v276_v19  ;;  %309 = vst [vmem:[%s690_s4 + $0xf8] sm:$0xff] %v277_v30 }

// kernel: res_down_forward.8
= control target key start
LH: loop header
LB: loop body
LE: loop exit
PB: predicated region body
PF: predicated region fallthrough
CT: control target
= control target key end

     0   :  { %v510_v1 = vmov 0   ;;  %vm136_vm0 = vcmask 1041408   ;;  %vm111_vm1 = vcmask 293888   ;;  %v19_v17 = vlaneseq  ;;  %s791_s1 = inlined_call_operand.vmem [shape: bf16[36,256], index: 1, kind: input, shape index: {}]   ;;  %s792_s0 = inlined_call_operand.vmem [shape: bf16[128,36], index: 0, kind: input, shape index: {}]   ;;  %s793_s3 = inlined_call_operand.vmem [shape: f32[1,256], index: 3, kind: output, shape index: {1}]   ;;  %s794_s4 = inlined_call_operand.vmem [shape: f32[1,256], index: 4, kind: output, shape index: {2}]   ;;  %s795_s2 = inlined_call_operand.vmem [shape: f32[128,256], index: 2, kind: output, shape index: {0}]  }
   0x1   :  { %v494_v0 = vld [vmem:[%s791_s1 + $0x4] ss:$8 sps:$4 sm:$0xff]   ;;  %175 = vmatprep.mubr.bf16.mxu0 %v510_v1  ;;  %215 = vmatprep.mubr.bf16.mxu1 %v510_v1  ;;  %v496_v2 = vld [vmem:[%s791_s1] ss:$8 sps:$4 sm:$0xff]   ;;  %v497_v3 = vld [vmem:[%s791_s1 + $0x14] ss:$8 sps:$4 sm:$0xff]  }
   0x2   :  { %143 = vmatprep.subr.bf16.mxu0 %v494_v0  ;;  %v45_v4 = vld [vmem:[%s791_s1 + $0x20] sm:$0x33]  ;;  %485 = vmatprep.subr.bf16.mxu1 %v494_v0  ;;  %v499_v5 = vld [vmem:[%s791_s1 + $0x10] ss:$8 sps:$4 sm:$0xff]   ;;  %v503_v11 = vld [vmem:[%s792_s0 + $0x8] sm:$0xff]   ;;  %vm586_vm2 = vcmp.lt.s32.totalorder %v19_v17, 256 }
   0x3   :  { %144 = vmatpush1.bf16.msra.mxu0 %v496_v2  ;;  %488 = vmatpush1.bf16.msra.mxu1 %v496_v2  ;;  %v475_v6 = vcombine.high %v45_v4, %v45_v4  ;;  %v474_v7 = vcombine.low %v45_v4, %v45_v4  ;;  %v502_v9 = vld [vmem:[%s792_s0] sm:$0xff]   ;;  %v506_v12 = vld [vmem:[%s792_s0 + $0x28] sm:$0xff]   ;;  %v505_v13 = vld [vmem:[%s792_s0 + $0x10] sm:$0xff]   ;;  %v511_v19 = vmov 0.0  }
   0x4   :  { %145 = vmatprep.subr.bf16.mxu0 %v497_v3  ;;  %486 = vmatprep.subr.bf16.mxu1 %v497_v3  ;;  %v504_v10 = vld [vmem:[%s792_s0 + $0x20] sm:$0xff]   ;;  %v508_v14 = vld [vmem:[%s792_s0 + $0x30] sm:$0xff]   ;;  %v507_v15 = vld [vmem:[%s792_s0 + $0x18] sm:$0xff]   ;;  %23 = vst.msk [vmem:[%s793_s3] sm:$0x3] %vm586_vm2, %v511_v19 }
   0x5   :  { %v138_v8 = vsel %vm136_vm0, %v474_v7, 0  ;;  %v509_v16 = vld [vmem:[%s792_s0 + $0x38] sm:$0xff]   ;;  %24 = vst.msk [vmem:[%s794_s4] sm:$0x3] %vm586_vm2, %v511_v19 }
   0x7   :  { %146 = vmatpush1.bf16.msra.mxu0 %v499_v5  ;;  %489 = vmatpush1.bf16.msra.mxu1 %v499_v5 }
   0x8   :  { %476 = vmatprep.subr.msk.bf16.mxu0 %vm136_vm0, %v475_v6  ;;  %487 = vmatprep.subr.msk.bf16.mxu1 %vm136_vm0, %v475_v6 }
   0xb   :  { %148 = vmatpush1.bf16.msra.mxu0 %v138_v8  ;;  %490 = vmatpush1.bf16.msra.mxu1 %v138_v8 }
   0xe   :  { %477 = vmatmul.mubr.msk.bf16.vlgmr.msra.gmra.mrb[0].mxu0 %vm111_vm1, %v502_v9  ;;  %481 = vmatmul.mubr.msk.bf16.vlgmr.msra.gmra.mrb[0].mxu1 %vm111_vm1, %v504_v10 }
   0xf   :  { %185 = vmatprep.mubr.bf16.mxu0 %v510_v1  ;;  %225 = vmatprep.mubr.bf16.mxu1 %v510_v1 }
  0x16   :  { %478 = vmatmul.mubr.msk.bf16.gmra.mrb[4].mxu0 %vm111_vm1, %v503_v11  ;;  %482 = vmatmul.mubr.msk.bf16.gmra.mrb[4].mxu1 %vm111_vm1, %v506_v12 }
  0x17   :  { %195 = vmatprep.mubr.bf16.mxu0 %v510_v1  ;;  %235 = vmatprep.mubr.bf16.mxu1 %v510_v1 }
  0x1e   :  { %479 = vmatmul.mubr.msk.bf16.gmra.mrb[8].mxu0 %vm111_vm1, %v505_v13  ;;  %483 = vmatmul.mubr.msk.bf16.gmra.mrb[8].mxu1 %vm111_vm1, %v508_v14 }
  0x1f   :  { %205 = vmatprep.mubr.bf16.mxu0 %v510_v1  ;;  %245 = vmatprep.mubr.bf16.mxu1 %v510_v1 }
  0x26   :  { %480 = vmatmul.mubr.msk.bf16.gmra.mrb[12].mxu0 %vm111_vm1, %v507_v15  ;;  %484 = vmatmul.mubr.msk.bf16.gmra.mrb[12].mxu1 %vm111_vm1, %v509_v16 }
  0xe1   :  { %v177_v20 = vpop.f32.mrb[0].mxu0  ;;  %v600_v21 = vpop.f32.mrb[0].mxu1 }
  0xe2   :  { %256 = vst [vmem:[%s795_s2] sm:$0xff] %v177_v20  ;;  %v179_v22 = vpop.f32.mrb[1].mxu0  ;;  %272 = vst [vmem:[%s795_s2 + $0x80] sm:$0xff] %v600_v21  ;;  %v609_v23 = vpop.f32.mrb[1].mxu1  ;;  %v356_v26 = vmul.f32 %v177_v20, %v177_v20 }
  0xe3   :  { %257 = vst [vmem:[%s795_s2 + $0x8] sm:$0xff] %v179_v22  ;;  %v181_v24 = vpop.f32.mrb[2].mxu0  ;;  %273 = vst [vmem:[%s795_s2 + $0x88] sm:$0xff] %v609_v23  ;;  %v618_v25 = vpop.f32.mrb[2].mxu1  ;;  %v357_v31 = vmul.f32 %v179_v22, %v179_v22 }
  0xe4   :  { %258 = vst [vmem:[%s795_s2 + $0x10] sm:$0xff] %v181_v24  ;;  %v289_v27 = vadd.f32 %v181_v24, %v177_v20  ;;  %v358_v28 = vmul.f32 %v181_v24, %v181_v24  ;;  %v183_v29 = vpop.f32.mrb[3].mxu0  ;;  %274 = vst [vmem:[%s795_s2 + $0x90] sm:$0xff] %v618_v25  ;;  %v627_v30 = vpop.f32.mrb[3].mxu1 }
  0xe5   :  { %259 = vst [vmem:[%s795_s2 + $0x18] sm:$0xff] %v183_v29  ;;  %v310_v32 = vadd.f32 %v183_v29, %v179_v22  ;;  %v359_v33 = vmul.f32 %v183_v29, %v183_v29  ;;  %275 = vst [vmem:[%s795_s2 + $0x98] sm:$0xff] %v627_v30 }
  0xe6   :  { %v388_v34 = vadd.f32 %v358_v28, %v356_v26 }
  0xe7   :  { %v409_v35 = vadd.f32 %v359_v33, %v357_v31 }
  0xe9   :  { %v187_v36 = vpop.f32.mrb[4].mxu0  ;;  %v636_v37 = vpop.f32.mrb[4].mxu1 }
  0xea   :  { %260 = vst [vmem:[%s795_s2 + $0x20] sm:$0xff] %v187_v36  ;;  %v290_v38 = vadd.f32 %v289_v27, %v187_v36  ;;  %v360_v39 = vmul.f32 %v187_v36, %v187_v36  ;;  %v189_v40 = vpop.f32.mrb[5].mxu0  ;;  %276 = vst [vmem:[%s795_s2 + $0xa0] sm:$0xff] %v636_v37  ;;  %v645_v41 = vpop.f32.mrb[5].mxu1  ;;  %v372_v36 = vmul.f32 %v600_v21, %v600_v21 }
  0xeb   :  { %261 = vst [vmem:[%s795_s2 + $0x28] sm:$0xff] %v189_v40  ;;  %v311_v42 = vadd.f32 %v310_v32, %v189_v40  ;;  %v361_v43 = vmul.f32 %v189_v40, %v189_v40  ;;  %v191_v44 = vpop.f32.mrb[6].mxu0  ;;  %277 = vst [vmem:[%s795_s2 + $0xa8] sm:$0xff] %v645_v41  ;;  %v654_v45 = vpop.f32.mrb[6].mxu1  ;;  %v373_v40 = vmul.f32 %v609_v23, %v609_v23 }
  0xec   :  { %v389_v46 = vadd.f32 %v388_v34, %v360_v39  ;;  %262 = vst [vmem:[%s795_s2 + $0x30] sm:$0xff] %v191_v44  ;;  %v291_v47 = vadd.f32 %v290_v38, %v191_v44  ;;  %v362_v48 = vmul.f32 %v191_v44, %v191_v44  ;;  %v193_v49 = vpop.f32.mrb[7].mxu0  ;;  %278 = vst [vmem:[%s795_s2 + $0xb0] sm:$0xff] %v654_v45  ;;  %v663_v50 = vpop.f32.mrb[7].mxu1 }
  0xed   :  { %v410_v51 = vadd.f32 %v409_v35, %v361_v43  ;;  %263 = vst [vmem:[%s795_s2 + $0x38] sm:$0xff] %v193_v49  ;;  %v312_v52 = vadd.f32 %v311_v42, %v193_v49  ;;  %v363_v53 = vmul.f32 %v193_v49, %v193_v49  ;;  %279 = vst [vmem:[%s795_s2 + $0xb8] sm:$0xff] %v663_v50 }
  0xee   :  { %v390_v54 = vadd.f32 %v389_v46, %v362_v48  ;;  %v374_v44 = vmul.f32 %v618_v25, %v618_v25  ;;  %v375_v48 = vmul.f32 %v627_v30, %v627_v30 }
  0xef   :  { %v411_v55 = vadd.f32 %v410_v51, %v363_v53 }
  0xf1   :  { %v197_v56 = vpop.f32.mrb[8].mxu0  ;;  %v672_v57 = vpop.f32.mrb[8].mxu1 }
  0xf2   :  { %264 = vst [vmem:[%s795_s2 + $0x40] sm:$0xff] %v197_v56  ;;  %v292_v58 = vadd.f32 %v291_v47, %v197_v56  ;;  %v364_v59 = vmul.f32 %v197_v56, %v197_v56  ;;  %v199_v60 = vpop.f32.mrb[9].mxu0  ;;  %280 = vst [vmem:[%s795_s2 + $0xc0] sm:$0xff] %v672_v57  ;;  %v681_v61 = vpop.f32.mrb[9].mxu1 }
  0xf3   :  { %265 = vst [vmem:[%s795_s2 + $0x48] sm:$0xff] %v199_v60  ;;  %v313_v62 = vadd.f32 %v312_v52, %v199_v60  ;;  %v365_v63 = vmul.f32 %v199_v60, %v199_v60  ;;  %v201_v0 = vpop.f32.mrb[10].mxu0  ;;  %281 = vst [vmem:[%s795_s2 + $0xc8] sm:$0xff] %v681_v61  ;;  %v690_v1 = vpop.f32.mrb[10].mxu1 }
  0xf4   :  { %v391_v2 = vadd.f32 %v390_v54, %v364_v59  ;;  %266 = vst [vmem:[%s795_s2 + $0x50] sm:$0xff] %v201_v0  ;;  %v293_v3 = vadd.f32 %v292_v58, %v201_v0  ;;  %v366_v4 = vmul.f32 %v201_v0, %v201_v0  ;;  %v203_v5 = vpop.f32.mrb[11].mxu0  ;;  %282 = vst [vmem:[%s795_s2 + $0xd0] sm:$0xff] %v690_v1  ;;  %v699_v6 = vpop.f32.mrb[11].mxu1 }
  0xf5   :  { %v412_v7 = vadd.f32 %v411_v55, %v365_v63  ;;  %267 = vst [vmem:[%s795_s2 + $0x58] sm:$0xff] %v203_v5  ;;  %v314_v8 = vadd.f32 %v313_v62, %v203_v5  ;;  %v367_v9 = vmul.f32 %v203_v5, %v203_v5  ;;  %283 = vst [vmem:[%s795_s2 + $0xd8] sm:$0xff] %v699_v6 }
  0xf6   :  { %v392_v10 = vadd.f32 %v391_v2, %v366_v4  ;;  %v380_v62 = vmul.f32 %v672_v57, %v672_v57  ;;  %v381_v0 = vmul.f32 %v681_v61, %v681_v61  ;;  %v382_v4 = vmul.f32 %v690_v1, %v690_v1 }
  0xf7   :  { %v413_v11 = vadd.f32 %v412_v7, %v367_v9 }
  0xf9   :  { %v207_v12 = vpop.f32.mrb[12].mxu0  ;;  %v708_v13 = vpop.f32.mrb[12].mxu1 }
  0xfa   :  { %268 = vst [vmem:[%s795_s2 + $0x60] sm:$0xff] %v207_v12  ;;  %v294_v14 = vadd.f32 %v293_v3, %v207_v12  ;;  %v368_v15 = vmul.f32 %v207_v12, %v207_v12  ;;  %v209_v16 = vpop.f32.mrb[13].mxu0  ;;  %284 = vst [vmem:[%s795_s2 + $0xe0] sm:$0xff] %v708_v13  ;;  %v249_v19 = vpop.f32.mrb[13].mxu1 }
  0xfb   :  { %269 = vst [vmem:[%s795_s2 + $0x68] sm:$0xff] %v209_v16  ;;  %v315_v20 = vadd.f32 %v314_v8, %v209_v16  ;;  %v369_v22 = vmul.f32 %v209_v16, %v209_v16  ;;  %v211_v24 = vpop.f32.mrb[14].mxu0  ;;  %285 = vst [vmem:[%s795_s2 + $0xe8] sm:$0xff] %v249_v19  ;;  %v251_v26 = vpop.f32.mrb[14].mxu1  ;;  %v385_v8 = vmul.f32 %v249_v19, %v249_v19 }
  0xfc   :  { %v393_v27 = vadd.f32 %v392_v10, %v368_v15  ;;  %270 = vst [vmem:[%s795_s2 + $0x70] sm:$0xff] %v211_v24  ;;  %v295_v28 = vadd.f32 %v294_v14, %v211_v24  ;;  %v370_v29 = vmul.f32 %v211_v24, %v211_v24  ;;  %v213_v31 = vpop.f32.mrb[15].mxu0  ;;  %286 = vst [vmem:[%s795_s2 + $0xf0] sm:$0xff] %v251_v26  ;;  %v253_v32 = vpop.f32.mrb[15].mxu1 }
  0xfd   :  { %v414_v33 = vadd.f32 %v413_v11, %v369_v22  ;;  %271 = vst [vmem:[%s795_s2 + $0x78] sm:$0xff] %v213_v31  ;;  %v316_v34 = vadd.f32 %v315_v20, %v213_v31  ;;  %v371_v35 = vmul.f32 %v213_v31, %v213_v31  ;;  %287 = vst [vmem:[%s795_s2 + $0xf8] sm:$0xff] %v253_v32 }
  0xfe   :  { %v296_v38 = vadd.f32 %v295_v28, %v600_v21  ;;  %v394_v39 = vadd.f32 %v393_v27, %v370_v29  ;;  %v376_v21 = vmul.f32 %v636_v37, %v636_v37  ;;  %v386_v15 = vmul.f32 %v251_v26, %v251_v26 }
  0xff   :  { %v317_v42 = vadd.f32 %v316_v34, %v609_v23  ;;  %v415_v43 = vadd.f32 %v414_v33, %v371_v35  ;;  %v377_v23 = vmul.f32 %v645_v41, %v645_v41  ;;  %v387_v20 = vmul.f32 %v253_v32, %v253_v32 }
 0x100   :  { %v297_v46 = vadd.f32 %v296_v38, %v618_v25  ;;  %v395_v47 = vadd.f32 %v394_v39, %v372_v36  ;;  %v378_v25 = vmul.f32 %v654_v45, %v654_v45 }
 0x101   :  { %v318_v49 = vadd.f32 %v317_v42, %v627_v30  ;;  %v416_v51 = vadd.f32 %v415_v43, %v373_v40  ;;  %v379_v30 = vmul.f32 %v663_v50, %v663_v50 }
 0x102   :  { %v396_v52 = vadd.f32 %v395_v47, %v374_v44  ;;  %v298_v53 = vadd.f32 %v297_v46, %v636_v37 }
 0x103   :  { %v417_v54 = vadd.f32 %v416_v51, %v375_v48  ;;  %v319_v55 = vadd.f32 %v318_v49, %v645_v41 }
 0x104   :  { %v299_v56 = vadd.f32 %v298_v53, %v654_v45  ;;  %v397_v58 = vadd.f32 %v396_v52, %v376_v21 }
 0x105   :  { %v320_v59 = vadd.f32 %v319_v55, %v663_v50  ;;  %v418_v60 = vadd.f32 %v417_v54, %v377_v23  ;;  %v384_v50 = vmul.f32 %v708_v13, %v708_v13 }
 0x106   :  { %v300_v37 = vadd.f32 %v299_v56, %v672_v57  ;;  %v398_v63 = vadd.f32 %v397_v58, %v378_v25  ;;  %v383_v57 = vmul.f32 %v699_v6, %v699_v6  ;;  %v288_v58 = vld [vmem:[%s793_s3] sm:$0x3] }
 0x107   :  { %v321_v41 = vadd.f32 %v320_v59, %v681_v61  ;;  %v419_v2 = vadd.f32 %v418_v60, %v379_v30  ;;  %v355_v59 = vld [vmem:[%s794_s4] sm:$0x3] }
 0x108   :  { %v399_v45 = vadd.f32 %v398_v63, %v380_v62  ;;  %v301_v3 = vadd.f32 %v300_v37, %v690_v1 }
 0x109   :  { %v420_v5 = vadd.f32 %v419_v2, %v381_v0  ;;  %v322_v7 = vadd.f32 %v321_v41, %v699_v6  ;;  %v512_v6 = vmov 1966171168  }
 0x10a   :  { %v400_v9 = vadd.f32 %v399_v45, %v382_v4  ;;  %v302_v61 = vadd.f32 %v301_v3, %v708_v13  ;;  %v335_v34 = vunpack.c.l.s4 %v512_v6 }
 0x10b   :  { %v421_v10 = vadd.f32 %v420_v5, %v383_v57  ;;  %v323_v11 = vadd.f32 %v322_v7, %v249_v19 }
 0x10c   :  { %v401_v12 = vadd.f32 %v400_v9, %v384_v50  ;;  %v303_v14 = vadd.f32 %v302_v61, %v251_v26  ;;  %v336_v42 = vunpack.c.0.s8 %v335_v34 }
 0x10d   :  { %v422_v16 = vadd.f32 %v421_v10, %v385_v8  ;;  %v324_v1 = vadd.f32 %v323_v11, %v253_v32  ;;  %v338_v32 = vshrl.u32 %v19_v17, 7 }
 0x10e   :  { %v304_v22 = vrot.slane %v303_v14, 4  ;;  %v402_v24 = vadd.f32 %v401_v12, %v386_v15 }
 0x10f   :  { %v325_v27 = vrot.slane %v324_v1, 4  ;;  %v423_v28 = vadd.f32 %v422_v16, %v387_v20  ;;  %v339_v52 = vsub.s32 %v336_v42, %v338_v32 }
 0x110   :  { %v305_v29 = vadd.f32 %v304_v22, %v303_v14  ;;  %v403_v31 = vrot.slane %v402_v24, 4 }
 0x111   :  { %v326_v33 = vadd.f32 %v325_v27, %v324_v1  ;;  %v424_v35 = vrot.slane %v423_v28, 4 }
 0x112   :  { %v306_v36 = vrot.slane %v305_v29, 2  ;;  %v404_v13 = vadd.f32 %v403_v31, %v402_v24 }
 0x113   :  { %v327_v38 = vrot.slane %v326_v33, 2  ;;  %v425_v19 = vadd.f32 %v424_v35, %v423_v28 }
 0x114   :  { %v307_v39 = vadd.f32 %v306_v36, %v305_v29  ;;  %v405_v40 = vrot.slane %v404_v13, 2 }
 0x115   :  { %v328_v26 = vadd.f32 %v327_v38, %v326_v33  ;;  %v426_v43 = vrot.slane %v425_v19, 2 }
 0x116   :  { %v308_v44 = vrot.slane %v307_v39, 1  ;;  %v406_v46 = vadd.f32 %v405_v40, %v404_v13 }
 0x117   :  { %v329_v47 = vrot.slane %v328_v26, 1  ;;  %v427_v48 = vadd.f32 %v426_v43, %v425_v19 }
 0x118   :  { %v309_v49 = vadd.f32 %v308_v44, %v307_v39  ;;  %v407_v51 = vrot.slane %v406_v46, 1 }
 0x119   :  { %v330_v21 = vadd.f32 %v329_v47, %v328_v26  ;;  %v428_v53 = vrot.slane %v427_v48, 1 }
 0x11a   :  { %v408_v23 = vadd.f32 %v407_v51, %v406_v46 }
 0x11b   :  { %v333_v54 = vcombine.low %v309_v49, %v330_v21  ;;  %v429_v55 = vadd.f32 %v428_v53, %v427_v48 }
 0x11d   :  { %v340_v25 = vrot.slane %v333_v54, %v339_v52  ;;  %v432_v56 = vcombine.low %v408_v23, %v429_v55 }
 0x11f   :  { %v347_v17 = vrot.slane %v340_v25, %v339_v52  ;;  %v439_v30 = vrot.slane %v432_v56, %v339_v52 }
 0x121   :  { %v349_v60 = vadd.f32 %v347_v17, %v288_v58  ;;  %v446_v37 = vrot.slane %v439_v30, %v339_v52 }
 0x123   :  { %354 = vst.msk [vmem:[%s793_s3] sm:$0x3] %vm586_vm2, %v349_v60  ;;  %v448_v62 = vadd.f32 %v446_v37, %v355_v59 }
 0x125   :  { %449 = vst.msk [vmem:[%s794_s4] sm:$0x3] %vm586_vm2, %v448_v62 }

// kernel: res_down_forward.10
= control target key start
LH: loop header
LB: loop body
LE: loop exit
PB: predicated region body
PF: predicated region fallthrough
CT: control target
= control target key end

     0   :  { %vm113_vm0 = vcmask 588800   ;;  %vm138_vm1 = vcmask 1043456   ;;  %v417_v14 = vmov 0.0   ;;  %s556_s1 = inlined_call_operand.vmem [shape: bf16[72,128], index: 1, kind: input, shape index: {}]   ;;  %s557_s0 = inlined_call_operand.vmem [shape: bf16[128,72], index: 0, kind: input, shape index: {}]   ;;  %s558_s3 = inlined_call_operand.vmem [shape: f32[1,128], index: 3, kind: output, shape index: {1}]   ;;  %s559_s4 = inlined_call_operand.vmem [shape: f32[1,128], index: 4, kind: output, shape index: {2}]   ;;  %s560_s2 = inlined_call_operand.vmem [shape: f32[128,128], index: 2, kind: output, shape index: {0}]  }
   0x1   :  { %v404_v0 = vld [vmem:[%s556_s1] sm:$0xff]   ;;  %v405_v1 = vld [vmem:[%s556_s1 + $0x8] sm:$0xff]   ;;  %v406_v2 = vld [vmem:[%s556_s1 + $0x10] sm:$0xff]   ;;  %19 = vst [vmem:[%s558_s3] sm:$0x1] %v417_v14 }
   0x2   :  { %365 = vmatprep.subr.bf16.mxu0 %v404_v0  ;;  %391 = vmatprep.subr.bf16.mxu1 %v404_v0  ;;  %v409_v3 = vld [vmem:[%s557_s0] sm:$0xff]   ;;  %v407_v4 = vld [vmem:[%s556_s1 + $0x18] sm:$0xff]   ;;  %v410_v8 = vld [vmem:[%s557_s0 + $0x8] sm:$0xff]   ;;  %20 = vst [vmem:[%s559_s4] sm:$0x1] %v417_v14 }
   0x3   :  { %366 = vmatpush3.bf16.msra.mxu0 %v404_v0  ;;  %396 = vmatpush3.bf16.msra.mxu1 %v404_v0  ;;  %v413_v5 = vld [vmem:[%s557_s0 + $0x20] sm:$0xff]   ;;  %v414_v9 = vld [vmem:[%s557_s0 + $0x28] sm:$0xff]   ;;  %v411_v10 = vld [vmem:[%s557_s0 + $0x10] sm:$0xff]  }
   0x4   :  { %367 = vmatprep.subr.bf16.mxu0 %v405_v1  ;;  %392 = vmatprep.subr.bf16.mxu1 %v405_v1  ;;  %v408_v6 = vld [vmem:[%s556_s1 + $0x20] ss:$0 sps:$4 sm:$0xff]   ;;  %v415_v11 = vld [vmem:[%s557_s0 + $0x30] sm:$0xff]   ;;  %v412_v12 = vld [vmem:[%s557_s0 + $0x18] sm:$0xff]  }
   0x5   :  { %375 = vmatprep.mubr.msk.bf16.mxu0 %vm113_vm0, %v409_v3  ;;  %383 = vmatprep.mubr.msk.bf16.mxu1 %vm113_vm0, %v413_v5  ;;  %v140_v7 = vsel %vm138_vm1, %v408_v6, 0  ;;  %v416_v13 = vld [vmem:[%s557_s0 + $0x38] sm:$0xff]  }
   0x7   :  { %368 = vmatpush3.bf16.msra.mxu0 %v405_v1  ;;  %397 = vmatpush3.bf16.msra.mxu1 %v405_v1 }
   0x8   :  { %369 = vmatprep.subr.bf16.mxu0 %v406_v2  ;;  %393 = vmatprep.subr.bf16.mxu1 %v406_v2 }
   0xb   :  { %370 = vmatpush3.bf16.msra.mxu0 %v406_v2  ;;  %398 = vmatpush3.bf16.msra.mxu1 %v406_v2 }
   0xc   :  { %371 = vmatprep.subr.bf16.mxu0 %v407_v4  ;;  %394 = vmatprep.subr.bf16.mxu1 %v407_v4 }
   0xf   :  { %372 = vmatpush3.bf16.msra.mxu0 %v407_v4  ;;  %399 = vmatpush3.bf16.msra.mxu1 %v407_v4 }
  0x10   :  { %401 = vmatprep.subr.msk.bf16.mxu0 %vm138_vm1, %v408_v6  ;;  %402 = vmatprep.subr.msk.bf16.mxu1 %vm138_vm1, %v408_v6 }
  0x13   :  { %374 = vmatpush3.bf16.msra.mxu0 %v140_v7  ;;  %400 = vmatpush3.bf16.msra.mxu1 %v140_v7 }
  0x16   :  { %376 = vmatmul.mubr.msk.bf16.vlgmr.msra.gmra.mrb[0].mxu0 %vm113_vm0, %v410_v8  ;;  %384 = vmatmul.mubr.msk.bf16.vlgmr.msra.gmra.mrb[0].mxu1 %vm113_vm0, %v414_v9 }
  0x17   :  { %379 = vmatprep.mubr.msk.bf16.mxu0 %vm113_vm0, %v411_v10  ;;  %387 = vmatprep.mubr.msk.bf16.mxu1 %vm113_vm0, %v415_v11 }
  0x1e   :  { %380 = vmatmul.mubr.msk.bf16.gmra.mrb[4].mxu0 %vm113_vm0, %v412_v12  ;;  %388 = vmatmul.mubr.msk.bf16.gmra.mrb[4].mxu1 %vm113_vm0, %v416_v13 }
  0xe9   :  { %v377_v15 = vpop.f32.mrb[0].mxu0  ;;  %v385_v16 = vpop.f32.mrb[0].mxu1 }
  0xea   :  { %241 = vst [vmem:[%s560_s2 + $0x10] sm:$0xff] %v377_v15  ;;  %v176_v17 = vpop.f32.mrb[1].mxu0  ;;  %249 = vst [vmem:[%s560_s2 + $0x50] sm:$0xff] %v385_v16  ;;  %v208_v18 = vpop.f32.mrb[1].mxu1  ;;  %v282_v26 = vmul.f32 %v377_v15, %v377_v15  ;;  %v290_v58 = vmul.f32 %v385_v16, %v385_v16 }
  0xeb   :  { %239 = vst [vmem:[%s560_s2] sm:$0xff] %v176_v17  ;;  %v378_v19 = vpop.f32.mrb[2].mxu0  ;;  %247 = vst [vmem:[%s560_s2 + $0x40] sm:$0xff] %v208_v18  ;;  %v386_v20 = vpop.f32.mrb[2].mxu1  ;;  %v280_v23 = vmul.f32 %v176_v17, %v176_v17  ;;  %v288_v52 = vmul.f32 %v208_v18, %v208_v18 }
  0xec   :  { %242 = vst [vmem:[%s560_s2 + $0x18] sm:$0xff] %v378_v19  ;;  %v179_v21 = vpop.f32.mrb[3].mxu0  ;;  %250 = vst [vmem:[%s560_s2 + $0x58] sm:$0xff] %v386_v20  ;;  %v211_v22 = vpop.f32.mrb[3].mxu1  ;;  %v283_v29 = vmul.f32 %v378_v19, %v378_v19  ;;  %v291_v61 = vmul.f32 %v386_v20, %v386_v20 }
  0xed   :  { %240 = vst [vmem:[%s560_s2 + $0x8] sm:$0xff] %v179_v21  ;;  %v256_v24 = vadd.f32 %v179_v21, %v176_v17  ;;  %v281_v25 = vmul.f32 %v179_v21, %v179_v21  ;;  %248 = vst [vmem:[%s560_s2 + $0x48] sm:$0xff] %v211_v22  ;;  %v289_v57 = vmul.f32 %v211_v22, %v211_v22 }
  0xef   :  { %v257_v27 = vadd.f32 %v377_v15, %v256_v24  ;;  %v296_v28 = vadd.f32 %v281_v25, %v280_v23  ;;  %v279_v25 = vld [vmem:[%s559_s4] sm:$0x1] }
  0xf1   :  { %v297_v30 = vadd.f32 %v296_v28, %v282_v26  ;;  %v381_v31 = vpop.f32.mrb[4].mxu0  ;;  %v258_v32 = vadd.f32 %v378_v19, %v257_v27  ;;  %v389_v33 = vpop.f32.mrb[4].mxu1 }
  0xf2   :  { %245 = vst [vmem:[%s560_s2 + $0x30] sm:$0xff] %v381_v31  ;;  %v192_v34 = vpop.f32.mrb[5].mxu0  ;;  %253 = vst [vmem:[%s560_s2 + $0x70] sm:$0xff] %v389_v33  ;;  %v224_v35 = vpop.f32.mrb[5].mxu1  ;;  %v286_v46 = vmul.f32 %v381_v31, %v381_v31  ;;  %v294_v6 = vmul.f32 %v389_v33, %v389_v33 }
  0xf3   :  { %243 = vst [vmem:[%s560_s2 + $0x20] sm:$0xff] %v192_v34  ;;  %v259_v36 = vadd.f32 %v258_v32, %v192_v34  ;;  %v284_v37 = vmul.f32 %v192_v34, %v192_v34  ;;  %v298_v38 = vadd.f32 %v297_v30, %v283_v29  ;;  %v382_v39 = vpop.f32.mrb[6].mxu0  ;;  %251 = vst [vmem:[%s560_s2 + $0x60] sm:$0xff] %v224_v35  ;;  %v390_v40 = vpop.f32.mrb[6].mxu1 }
  0xf4   :  { %246 = vst [vmem:[%s560_s2 + $0x38] sm:$0xff] %v382_v39  ;;  %v195_v41 = vpop.f32.mrb[7].mxu0  ;;  %254 = vst [vmem:[%s560_s2 + $0x78] sm:$0xff] %v390_v40  ;;  %v227_v42 = vpop.f32.mrb[7].mxu1  ;;  %v287_v49 = vmul.f32 %v382_v39, %v382_v39  ;;  %v292_v0 = vmul.f32 %v224_v35, %v224_v35  ;;  %v295_v9 = vmul.f32 %v390_v40, %v390_v40 }
  0xf5   :  { %v299_v43 = vadd.f32 %v298_v38, %v284_v37  ;;  %244 = vst [vmem:[%s560_s2 + $0x28] sm:$0xff] %v195_v41  ;;  %v260_v44 = vadd.f32 %v259_v36, %v195_v41  ;;  %v285_v45 = vmul.f32 %v195_v41, %v195_v41  ;;  %252 = vst [vmem:[%s560_s2 + $0x68] sm:$0xff] %v227_v42 }
  0xf6   :  { %v293_v5 = vmul.f32 %v227_v42, %v227_v42 }
  0xf7   :  { %v261_v47 = vadd.f32 %v381_v31, %v260_v44  ;;  %v300_v48 = vadd.f32 %v299_v43, %v285_v45 }
  0xf9   :  { %v301_v50 = vadd.f32 %v300_v48, %v286_v46  ;;  %v262_v51 = vadd.f32 %v382_v39, %v261_v47 }
  0xfb   :  { %v263_v53 = vadd.f32 %v262_v51, %v208_v18  ;;  %v302_v54 = vadd.f32 %v301_v50, %v287_v49 }
  0xfd   :  { %v303_v55 = vadd.f32 %v302_v54, %v288_v52  ;;  %v264_v56 = vadd.f32 %v263_v53, %v211_v22  ;;  %v255_v22 = vld [vmem:[%s558_s3] sm:$0x1] }
  0xff   :  { %v265_v59 = vadd.f32 %v385_v16, %v264_v56  ;;  %v304_v60 = vadd.f32 %v303_v55, %v289_v57 }
 0x101   :  { %v305_v62 = vadd.f32 %v304_v60, %v290_v58  ;;  %v266_v63 = vadd.f32 %v386_v20, %v265_v59 }
 0x103   :  { %v267_v1 = vadd.f32 %v266_v63, %v224_v35  ;;  %v306_v2 = vadd.f32 %v305_v62, %v291_v61 }
 0x105   :  { %v307_v3 = vadd.f32 %v306_v2, %v292_v0  ;;  %v268_v4 = vadd.f32 %v267_v1, %v227_v42 }
 0x107   :  { %v269_v7 = vadd.f32 %v389_v33, %v268_v4  ;;  %v308_v8 = vadd.f32 %v307_v3, %v293_v5 }
 0x109   :  { %v270_v10 = vadd.f32 %v390_v40, %v269_v7  ;;  %v309_v11 = vadd.f32 %v308_v8, %v294_v6 }
 0x10b   :  { %v271_v12 = vrot.slane %v270_v10, 4  ;;  %v310_v13 = vadd.f32 %v309_v11, %v295_v9 }
 0x10d   :  { %v272_v14 = vadd.f32 %v271_v12, %v270_v10  ;;  %v311_v15 = vrot.slane %v310_v13, 4 }
 0x10f   :  { %v273_v16 = vrot.slane %v272_v14, 2  ;;  %v312_v17 = vadd.f32 %v311_v15, %v310_v13 }
 0x111   :  { %v274_v18 = vadd.f32 %v273_v16, %v272_v14  ;;  %v313_v19 = vrot.slane %v312_v17, 2 }
 0x113   :  { %v275_v20 = vrot.slane %v274_v18, 1  ;;  %v314_v21 = vadd.f32 %v313_v19, %v312_v17 }
 0x115   :  { %v276_v23 = vadd.f32 %v275_v20, %v274_v18  ;;  %v315_v24 = vrot.slane %v314_v21, 1 }
 0x117   :  { %v277_v26 = vadd.f32 %v276_v23, %v255_v22  ;;  %v316_v27 = vadd.f32 %v315_v24, %v314_v21 }
 0x119   :  { %278 = vst [vmem:[%s558_s3] sm:$0x1] %v277_v26  ;;  %v317_v28 = vadd.f32 %v316_v27, %v279_v25 }
 0x11b   :  { %318 = vst [vmem:[%s559_s4] sm:$0x1] %v317_v28 }

// kernel: res_down_forward.11
= control target key start
LH: loop header
LB: loop body
LE: loop exit
PB: predicated region body
PF: predicated region fallthrough
CT: control target
= control target key end

     0   :  { %s393_s0 = inlined_call_operand.vmem [shape: f32[128,128], index: 0, kind: input, shape index: {}]   ;;  %s394_s1 = inlined_call_operand.vmem [shape: f32[1,128], index: 1, kind: input, shape index: {}]   ;;  %s395_s2 = inlined_call_operand.vmem [shape: f32[1,128], index: 2, kind: input, shape index: {}]   ;;  %s396_s3 = inlined_call_operand.vmem [shape: f32[128,128], index: 3, kind: input, shape index: {}]   ;;  %s397_s4 = inlined_call_operand.vmem [shape: f32[128,128], index: 4, kind: output, shape index: {}]  }
   0x1   :  { %v17_v0 = vld [vmem:[%s393_s0] sm:$0xff]  ;;  %v18_v4 = vld [vmem:[%s393_s0 + $0x8] sm:$0xff]  ;;  %v19_v7 = vld [vmem:[%s393_s0 + $0x10] sm:$0xff] }
   0x2   :  { %v212_v1 = vld [vmem:[%s394_s1] ss:$0 sm:$0xff]  ;;  %v20_v8 = vld [vmem:[%s393_s0 + $0x18] sm:$0xff]  ;;  %v80_v10 = vld [vmem:[%s396_s3 + $0x8] sm:$0xff] }
   0x3   :  { %v217_v2 = vld [vmem:[%s395_s2] ss:$0 sm:$0xff]  ;;  %v40_v3 = vmul.f32 %v212_v1, %v17_v0  ;;  %v41_v6 = vmul.f32 %v212_v1, %v18_v4  ;;  %v42_v11 = vmul.f32 %v212_v1, %v19_v7  ;;  %v81_v12 = vld [vmem:[%s396_s3 + $0x10] sm:$0xff]  ;;  %v43_v13 = vmul.f32 %v212_v1, %v20_v8  ;;  %v82_v16 = vld [vmem:[%s396_s3 + $0x18] sm:$0xff] }
   0x4   :  { %v79_v5 = vld [vmem:[%s396_s3] sm:$0xff]  ;;  %v22_v18 = vld [vmem:[%s393_s0 + $0x28] sm:$0xff]  ;;  %v23_v19 = vld [vmem:[%s393_s0 + $0x30] sm:$0xff] }
   0x5   :  { %v63_v9 = vadd.f32 %v217_v2, %v40_v3  ;;  %v21_v14 = vld [vmem:[%s393_s0 + $0x20] sm:$0xff]  ;;  %v64_v15 = vadd.f32 %v217_v2, %v41_v6  ;;  %v65_v21 = vadd.f32 %v217_v2, %v42_v11  ;;  %v66_v22 = vadd.f32 %v217_v2, %v43_v13  ;;  %v24_v25 = vld [vmem:[%s393_s0 + $0x38] sm:$0xff]  ;;  %v84_v36 = vld [vmem:[%s396_s3 + $0x28] sm:$0xff] }
   0x6   :  { %v44_v17 = vmul.f32 %v212_v1, %v21_v14  ;;  %v83_v23 = vld [vmem:[%s396_s3 + $0x20] sm:$0xff]  ;;  %v45_v24 = vmul.f32 %v212_v1, %v22_v18  ;;  %v46_v28 = vmul.f32 %v212_v1, %v23_v19  ;;  %v47_v29 = vmul.f32 %v212_v1, %v24_v25  ;;  %v85_v37 = vld [vmem:[%s396_s3 + $0x30] sm:$0xff]  ;;  %v26_v41 = vld [vmem:[%s393_s0 + $0x48] sm:$0xff] }
   0x7   :  { %v95_v20 = vadd.f32 %v79_v5, %v63_v9  ;;  %v96_v26 = vadd.f32 %v80_v10, %v64_v15  ;;  %v97_v31 = vadd.f32 %v81_v12, %v65_v21  ;;  %v98_v32 = vadd.f32 %v82_v16, %v66_v22  ;;  %v25_v40 = vld [vmem:[%s393_s0 + $0x40] sm:$0xff]  ;;  %v86_v45 = vld [vmem:[%s396_s3 + $0x38] sm:$0xff]  ;;  %v27_v50 = vld [vmem:[%s393_s0 + $0x50] sm:$0xff] }
   0x8   :  { %v67_v27 = vadd.f32 %v217_v2, %v44_v17  ;;  %v68_v35 = vadd.f32 %v217_v2, %v45_v24  ;;  %v69_v48 = vadd.f32 %v217_v2, %v46_v28  ;;  %v70_v49 = vadd.f32 %v217_v2, %v47_v29  ;;  %v28_v51 = vld [vmem:[%s393_s0 + $0x58] sm:$0xff]  ;;  %v87_v59 = vld [vmem:[%s396_s3 + $0x40] sm:$0xff]  ;;  %v88_v60 = vld [vmem:[%s396_s3 + $0x48] sm:$0xff] }
   0x9   :  { %vm111_vm0 = vcmp.ge.f32.partialorder %v95_v20, 0.0  ;;  %v127_v30 = vmul.f32 0.2, %v95_v20  ;;  %vm112_vm1 = vcmp.ge.f32.partialorder %v96_v26, 0.0  ;;  %v128_v33 = vmul.f32 0.2, %v96_v26 }
   0xa   :  { %v99_v34 = vadd.f32 %v83_v23, %v67_v27  ;;  %vm113_vm2 = vcmp.ge.f32.partialorder %v97_v31, 0.0  ;;  %v129_v39 = vmul.f32 0.2, %v97_v31  ;;  %vm114_vm3 = vcmp.ge.f32.partialorder %v98_v32, 0.0  ;;  %v29_v3 = vld [vmem:[%s393_s0 + $0x60] sm:$0xff]  ;;  %v30_v4 = vld [vmem:[%s393_s0 + $0x68] sm:$0xff] }
   0xb   :  { %v143_v38 = vsel %vm111_vm0, %v95_v20, %v127_v30  ;;  %v144_v42 = vsel %vm112_vm1, %v96_v26, %v128_v33  ;;  %v130_v43 = vmul.f32 0.2, %v98_v32  ;;  %v100_v47 = vadd.f32 %v84_v36, %v68_v35  ;;  %v89_v11 = vld [vmem:[%s396_s3 + $0x50] sm:$0xff]  ;;  %v90_v12 = vld [vmem:[%s396_s3 + $0x58] sm:$0xff]  ;;  %v91_v25 = vld [vmem:[%s396_s3 + $0x60] sm:$0xff] }
   0xc   :  { %159 = vst [vmem:[%s397_s4] sm:$0xff] %v143_v38  ;;  %vm115_vm4 = vcmp.ge.f32.partialorder %v99_v34, 0.0  ;;  %v131_v44 = vmul.f32 0.2, %v99_v34  ;;  %160 = vst [vmem:[%s397_s4 + $0x8] sm:$0xff] %v144_v42  ;;  %v145_v46 = vsel %vm113_vm2, %v97_v31, %v129_v39  ;;  %v48_v54 = vmul.f32 %v212_v1, %v25_v40  ;;  %v31_v17 = vld [vmem:[%s393_s0 + $0x70] sm:$0xff]  ;;  %v32_v18 = vld [vmem:[%s393_s0 + $0x78] sm:$0xff] }
   0xd   :  { %161 = vst [vmem:[%s397_s4 + $0x10] sm:$0xff] %v145_v46  ;;  %v146_v52 = vsel %vm114_vm3, %v98_v32, %v130_v43  ;;  %v49_v55 = vmul.f32 %v212_v1, %v26_v41  ;;  %vm116_vm5 = vcmp.ge.f32.partialorder %v100_v47, 0.0  ;;  %v132_v56 = vmul.f32 0.2, %v100_v47  ;;  %v92_v26 = vld [vmem:[%s396_s3 + $0x68] sm:$0xff] }
   0xe   :  { %v147_v53 = vsel %vm115_vm4, %v99_v34, %v131_v44  ;;  %162 = vst [vmem:[%s397_s4 + $0x18] sm:$0xff] %v146_v52  ;;  %v101_v57 = vadd.f32 %v85_v37, %v69_v48  ;;  %v102_v58 = vadd.f32 %v86_v45, %v70_v49  ;;  %v71_v61 = vadd.f32 %v217_v2, %v48_v54  ;;  %v94_v37 = vld [vmem:[%s396_s3 + $0x78] sm:$0xff] }
   0xf   :  { %163 = vst [vmem:[%s397_s4 + $0x20] sm:$0xff] %v147_v53  ;;  %v72_v62 = vadd.f32 %v217_v2, %v49_v55  ;;  %v50_v63 = vmul.f32 %v212_v1, %v27_v50  ;;  %v51_v0 = vmul.f32 %v212_v1, %v28_v51  ;;  %v148_v5 = vsel %vm116_vm5, %v100_v47, %v132_v56 }
  0x10   :  { %vm117_vm6 = vcmp.ge.f32.partialorder %v101_v57, 0.0  ;;  %v133_v6 = vmul.f32 0.2, %v101_v57  ;;  %vm118_vm7 = vcmp.ge.f32.partialorder %v102_v58, 0.0  ;;  %164 = vst [vmem:[%s397_s4 + $0x28] sm:$0xff] %v148_v5  ;;  %v103_v8 = vadd.f32 %v87_v59, %v71_v61 }
  0x11   :  { %v134_v7 = vmul.f32 0.2, %v102_v58  ;;  %v104_v9 = vadd.f32 %v88_v60, %v72_v62  ;;  %v73_v10 = vadd.f32 %v217_v2, %v50_v63  ;;  %v74_v14 = vadd.f32 %v217_v2, %v51_v0 }
  0x12   :  { %v149_v13 = vsel %vm117_vm6, %v101_v57, %v133_v6  ;;  %v52_v15 = vmul.f32 %v212_v1, %v29_v3  ;;  %v53_v16 = vmul.f32 %v212_v1, %v30_v4  ;;  %vm119_vm8 = vcmp.ge.f32.partialorder %v103_v8, 0.0 }
  0x13   :  { %165 = vst [vmem:[%s397_s4 + $0x30] sm:$0xff] %v149_v13  ;;  %v150_v19 = vsel %vm118_vm7, %v102_v58, %v134_v7  ;;  %v135_v20 = vmul.f32 0.2, %v103_v8  ;;  %vm120_vm9 = vcmp.ge.f32.partialorder %v104_v9, 0.0  ;;  %v136_v21 = vmul.f32 0.2, %v104_v9 }
  0x14   :  { %166 = vst [vmem:[%s397_s4 + $0x38] sm:$0xff] %v150_v19  ;;  %v105_v22 = vadd.f32 %v89_v11, %v73_v10  ;;  %v106_v23 = vadd.f32 %v90_v12, %v74_v14  ;;  %v75_v24 = vadd.f32 %v217_v2, %v52_v15  ;;  %v76_v28 = vadd.f32 %v217_v2, %v53_v16 }
  0x15   :  { %v151_v27 = vsel %vm119_vm8, %v103_v8, %v135_v20  ;;  %v54_v29 = vmul.f32 %v212_v1, %v31_v17  ;;  %v55_v30 = vmul.f32 %v212_v1, %v32_v18  ;;  %v152_v31 = vsel %vm120_vm9, %v104_v9, %v136_v21  ;;  %v93_v1 = vld [vmem:[%s396_s3 + $0x70] sm:$0xff] }
  0x16   :  { %167 = vst [vmem:[%s397_s4 + $0x40] sm:$0xff] %v151_v27  ;;  %vm121_vm10 = vcmp.ge.f32.partialorder %v105_v22, 0.0  ;;  %v137_v32 = vmul.f32 0.2, %v105_v22  ;;  %vm122_vm11 = vcmp.ge.f32.partialorder %v106_v23, 0.0  ;;  %168 = vst [vmem:[%s397_s4 + $0x48] sm:$0xff] %v152_v31  ;;  %v107_v34 = vadd.f32 %v91_v25, %v75_v24 }
  0x17   :  { %v138_v33 = vmul.f32 0.2, %v106_v23  ;;  %v108_v35 = vadd.f32 %v92_v26, %v76_v28  ;;  %v77_v36 = vadd.f32 %v217_v2, %v54_v29  ;;  %v78_v39 = vadd.f32 %v217_v2, %v55_v30 }
  0x18   :  { %v153_v38 = vsel %vm121_vm10, %v105_v22, %v137_v32  ;;  %vm123_vm12 = vcmp.ge.f32.partialorder %v107_v34, 0.0  ;;  %v139_v41 = vmul.f32 0.2, %v107_v34 }
  0x19   :  { %169 = vst [vmem:[%s397_s4 + $0x50] sm:$0xff] %v153_v38  ;;  %v154_v40 = vsel %vm122_vm11, %v106_v23, %v138_v33  ;;  %vm124_vm13 = vcmp.ge.f32.partialorder %v108_v35, 0.0  ;;  %v140_v42 = vmul.f32 0.2, %v108_v35  ;;  %v109_v43 = vadd.f32 %v93_v1, %v77_v36 }
  0x1a   :  { %170 = vst [vmem:[%s397_s4 + $0x58] sm:$0xff] %v154_v40  ;;  %v110_v44 = vadd.f32 %v94_v37, %v78_v39  ;;  %v155_v45 = vsel %vm123_vm12, %v107_v34, %v139_v41 }
  0x1b   :  { %171 = vst [vmem:[%s397_s4 + $0x60] sm:$0xff] %v155_v45  ;;  %v156_v2 = vsel %vm124_vm13, %v108_v35, %v140_v42  ;;  %vm125_vm14 = vcmp.ge.f32.partialorder %v109_v43, 0.0  ;;  %v141_v46 = vmul.f32 0.2, %v109_v43 }
  0x1c   :  { %vm126_vm15 = vcmp.ge.f32.partialorder %v110_v44, 0.0  ;;  %172 = vst [vmem:[%s397_s4 + $0x68] sm:$0xff] %v156_v2  ;;  %v142_v47 = vmul.f32 0.2, %v110_v44 }
  0x1d   :  { %v157_v48 = vsel %vm125_vm14, %v109_v43, %v141_v46 }
  0x1e   :  { %173 = vst [vmem:[%s397_s4 + $0x70] sm:$0xff] %v157_v48  ;;  %v158_v49 = vsel %vm126_vm15, %v110_v44, %v142_v47 }
  0x1f   :  { %174 = vst [vmem:[%s397_s4 + $0x78] sm:$0xff] %v158_v49 }

// kernel: res_down_forward.13
= control target key start
LH: loop header
LB: loop body
LE: loop exit
PB: predicated region body
PF: predicated region fallthrough
CT: control target
= control target key end

     0   :  { %v130_v0 = vlaneseq  ;;  %v174_v15 = vmov 0   ;;  %s376_s0 = inlined_call_operand.vmem [shape: f32[128,128], index: 0, kind: input, shape index: {}]   ;;  %s377_s1 = inlined_call_operand.vmem [shape: f32[1,128], index: 1, kind: input, shape index: {}]   ;;  %s378_s2 = inlined_call_operand.vmem [shape: f32[1,128], index: 2, kind: input, shape index: {}]   ;;  %s379_s3 = inlined_call_operand.vmem [shape: f32[1,128], index: 3, kind: input, shape index: {}]   ;;  %s380_s4 = inlined_call_operand.vmem [shape: f32[128,128], index: 4, kind: output, shape index: {}]  }
   0x1   :  { %v17_v1 = vld [vmem:[%s376_s0] sm:$0xff]  ;;  %v18_v7 = vld [vmem:[%s376_s0 + $0x8] sm:$0xff]  ;;  %v19_v8 = vld [vmem:[%s376_s0 + $0x10] sm:$0xff] }
   0x2   :  { %v206_v2 = vld [vmem:[%s377_s1] ss:$0 sm:$0xff]  ;;  %v131_v6 = vshrl.u32 %v130_v0, 7  ;;  %v20_v11 = vld [vmem:[%s376_s0 + $0x18] sm:$0xff]  ;;  %v22_v13 = vld [vmem:[%s376_s0 + $0x28] sm:$0xff] }
   0x3   :  { %v211_v3 = vld [vmem:[%s378_s2] ss:$0 sm:$0xff]  ;;  %v40_v4 = vmul.f32 %v206_v2, %v17_v1  ;;  %v41_v9 = vmul.f32 %v206_v2, %v18_v7  ;;  %v42_v10 = vmul.f32 %v206_v2, %v19_v8  ;;  %v43_v18 = vmul.f32 %v206_v2, %v20_v11  ;;  %v23_v30 = vld [vmem:[%s376_s0 + $0x30] sm:$0xff]  ;;  %v24_v35 = vld [vmem:[%s376_s0 + $0x38] sm:$0xff] }
   0x4   :  { %v127_v5 = vld [vmem:[%s379_s3] sm:$0x1]  ;;  %v132_v17 = vsub.s32 0, %v131_v6  ;;  %v45_v22 = vmul.f32 %v206_v2, %v22_v13  ;;  %v26_v41 = vld [vmem:[%s376_s0 + $0x48] sm:$0xff]  ;;  %v27_v42 = vld [vmem:[%s376_s0 + $0x50] sm:$0xff]  ;;  %v46_v45 = vmul.f32 %v206_v2, %v23_v30  ;;  %v47_v47 = vmul.f32 %v206_v2, %v24_v35 }
   0x5   :  { %vm128_vm0 = vcmp.ne.f32.partialorder %v127_v5, 0.0  ;;  %v21_v12 = vld [vmem:[%s376_s0 + $0x20] sm:$0xff]  ;;  %v63_v14 = vadd.f32 %v211_v3, %v40_v4  ;;  %v64_v19 = vadd.f32 %v211_v3, %v41_v9  ;;  %v65_v20 = vadd.f32 %v211_v3, %v42_v10  ;;  %v28_v60 = vld [vmem:[%s376_s0 + $0x58] sm:$0xff]  ;;  %v30_v9 = vld [vmem:[%s376_s0 + $0x68] sm:$0xff] }
   0x6   :  { %v129_v16 = vsel %vm128_vm0, 1, %v174_v15  ;;  %v44_v21 = vmul.f32 %v206_v2, %v21_v12  ;;  %v66_v25 = vadd.f32 %v211_v3, %v43_v18  ;;  %v25_v36 = vld [vmem:[%s376_s0 + $0x40] sm:$0xff]  ;;  %v68_v40 = vadd.f32 %v211_v3, %v45_v22  ;;  %v31_v10 = vld [vmem:[%s376_s0 + $0x70] sm:$0xff]  ;;  %v32_v11 = vld [vmem:[%s376_s0 + $0x78] sm:$0xff] }
   0x7   :  { %vm79_vm1 = vcmp.ge.f32.partialorder %v63_v14, 0.0  ;;  %v95_v23 = vmul.f32 0.2, %v63_v14  ;;  %v240_v24 = vrot.slane %v129_v16, %v132_v17  ;;  %vm80_vm2 = vcmp.ge.f32.partialorder %v64_v19, 0.0  ;;  %v29_v4 = vld [vmem:[%s376_s0 + $0x60] sm:$0xff] }
   0x8   :  { %v96_v26 = vmul.f32 0.2, %v64_v19  ;;  %vm81_vm3 = vcmp.ge.f32.partialorder %v65_v20, 0.0  ;;  %v97_v27 = vmul.f32 0.2, %v65_v20  ;;  %vm82_vm5 = vcmp.ge.f32.partialorder %v66_v25, 0.0 }
   0x9   :  { %v111_v28 = vsel %vm79_vm1, %v63_v14, %v95_v23  ;;  %vm134_vm4 = vcmp.eq.s32.totalorder %v240_v24, 1  ;;  %v98_v29 = vmul.f32 0.2, %v66_v25  ;;  %v67_v34 = vadd.f32 %v211_v3, %v44_v21 }
   0xa   :  { %v135_v31 = vsel %vm134_vm4, %v111_v28, %v63_v14  ;;  %v112_v32 = vsel %vm80_vm2, %v64_v19, %v96_v26  ;;  %v113_v33 = vsel %vm81_vm3, %v65_v20, %v97_v27  ;;  %vm84_vm7 = vcmp.ge.f32.partialorder %v68_v40, 0.0 }
   0xb   :  { %151 = vst [vmem:[%s380_s4] sm:$0xff] %v135_v31  ;;  %v136_v37 = vsel %vm134_vm4, %v112_v32, %v64_v19  ;;  %v137_v38 = vsel %vm134_vm4, %v113_v33, %v65_v20  ;;  %v114_v39 = vsel %vm82_vm5, %v66_v25, %v98_v29  ;;  %vm83_vm6 = vcmp.ge.f32.partialorder %v67_v34, 0.0 }
   0xc   :  { %152 = vst [vmem:[%s380_s4 + $0x8] sm:$0xff] %v136_v37  ;;  %153 = vst [vmem:[%s380_s4 + $0x10] sm:$0xff] %v137_v38  ;;  %v138_v43 = vsel %vm134_vm4, %v114_v39, %v66_v25  ;;  %v99_v44 = vmul.f32 0.2, %v67_v34  ;;  %v100_v46 = vmul.f32 0.2, %v68_v40  ;;  %v48_v48 = vmul.f32 %v206_v2, %v25_v36 }
   0xd   :  { %154 = vst [vmem:[%s380_s4 + $0x18] sm:$0xff] %v138_v43  ;;  %v69_v50 = vadd.f32 %v211_v3, %v46_v45  ;;  %v49_v51 = vmul.f32 %v206_v2, %v26_v41  ;;  %v50_v52 = vmul.f32 %v206_v2, %v27_v42  ;;  %v70_v55 = vadd.f32 %v211_v3, %v47_v47 }
   0xe   :  { %v115_v49 = vsel %vm83_vm6, %v67_v34, %v99_v44  ;;  %v116_v54 = vsel %vm84_vm7, %v68_v40, %v100_v46  ;;  %v71_v56 = vadd.f32 %v211_v3, %v48_v48  ;;  %v51_v8 = vmul.f32 %v206_v2, %v28_v60 }
   0xf   :  { %v139_v53 = vsel %vm134_vm4, %v115_v49, %v67_v34  ;;  %v140_v57 = vsel %vm134_vm4, %v116_v54, %v68_v40  ;;  %vm85_vm8 = vcmp.ge.f32.partialorder %v69_v50, 0.0  ;;  %v101_v58 = vmul.f32 0.2, %v69_v50 }
  0x10   :  { %155 = vst [vmem:[%s380_s4 + $0x20] sm:$0xff] %v139_v53  ;;  %v72_v59 = vadd.f32 %v211_v3, %v49_v51  ;;  %156 = vst [vmem:[%s380_s4 + $0x28] sm:$0xff] %v140_v57  ;;  %vm86_vm9 = vcmp.ge.f32.partialorder %v70_v55, 0.0  ;;  %v102_v61 = vmul.f32 0.2, %v70_v55  ;;  %vm87_vm10 = vcmp.ge.f32.partialorder %v71_v56, 0.0 }
  0x11   :  { %v103_v62 = vmul.f32 0.2, %v71_v56  ;;  %v117_v63 = vsel %vm85_vm8, %v69_v50, %v101_v58  ;;  %v73_v1 = vadd.f32 %v211_v3, %v50_v52  ;;  %v74_v17 = vadd.f32 %v211_v3, %v51_v8 }
  0x12   :  { %vm88_vm11 = vcmp.ge.f32.partialorder %v72_v59, 0.0  ;;  %v104_v0 = vmul.f32 0.2, %v72_v59  ;;  %v141_v5 = vsel %vm134_vm4, %v117_v63, %v69_v50  ;;  %v118_v6 = vsel %vm86_vm9, %v70_v55, %v102_v61 }
  0x13   :  { %v119_v7 = vsel %vm87_vm10, %v71_v56, %v103_v62  ;;  %157 = vst [vmem:[%s380_s4 + $0x30] sm:$0xff] %v141_v5  ;;  %v142_v12 = vsel %vm134_vm4, %v118_v6, %v70_v55  ;;  %vm89_vm12 = vcmp.ge.f32.partialorder %v73_v1, 0.0  ;;  %v105_v16 = vmul.f32 0.2, %v73_v1 }
  0x14   :  { %v143_v13 = vsel %vm134_vm4, %v119_v7, %v71_v56  ;;  %v120_v14 = vsel %vm88_vm11, %v72_v59, %v104_v0  ;;  %158 = vst [vmem:[%s380_s4 + $0x38] sm:$0xff] %v142_v12  ;;  %v52_v18 = vmul.f32 %v206_v2, %v29_v4  ;;  %v53_v19 = vmul.f32 %v206_v2, %v30_v9 }
  0x15   :  { %159 = vst [vmem:[%s380_s4 + $0x40] sm:$0xff] %v143_v13  ;;  %v144_v15 = vsel %vm134_vm4, %v120_v14, %v72_v59  ;;  %v54_v20 = vmul.f32 %v206_v2, %v31_v10  ;;  %v55_v21 = vmul.f32 %v206_v2, %v32_v11  ;;  %v121_v22 = vsel %vm89_vm12, %v73_v1, %v105_v16 }
  0x16   :  { %160 = vst [vmem:[%s380_s4 + $0x48] sm:$0xff] %v144_v15  ;;  %vm90_vm13 = vcmp.ge.f32.partialorder %v74_v17, 0.0  ;;  %v106_v23 = vmul.f32 0.2, %v74_v17  ;;  %v75_v25 = vadd.f32 %v211_v3, %v52_v18  ;;  %v145_v26 = vsel %vm134_vm4, %v121_v22, %v73_v1 }
  0x17   :  { %v76_v27 = vadd.f32 %v211_v3, %v53_v19  ;;  %v77_v28 = vadd.f32 %v211_v3, %v54_v20  ;;  %v78_v29 = vadd.f32 %v211_v3, %v55_v21  ;;  %161 = vst [vmem:[%s380_s4 + $0x50] sm:$0xff] %v145_v26 }
  0x18   :  { %v122_v30 = vsel %vm90_vm13, %v74_v17, %v106_v23  ;;  %vm91_vm14 = vcmp.ge.f32.partialorder %v75_v25, 0.0  ;;  %v107_v2 = vmul.f32 0.2, %v75_v25 }
  0x19   :  { %v146_v31 = vsel %vm134_vm4, %v122_v30, %v74_v17  ;;  %vm92_vm15 = vcmp.ge.f32.partialorder %v76_v27, 0.0  ;;  %v108_v32 = vmul.f32 0.2, %v76_v27  ;;  %vm93_vm0 = vcmp.ge.f32.partialorder %v77_v28, 0.0 }
  0x1a   :  { %162 = vst [vmem:[%s380_s4 + $0x58] sm:$0xff] %v146_v31  ;;  %v123_v33 = vsel %vm91_vm14, %v75_v25, %v107_v2  ;;  %v109_v34 = vmul.f32 0.2, %v77_v28  ;;  %vm94_vm1 = vcmp.ge.f32.partialorder %v78_v29, 0.0  ;;  %v110_v3 = vmul.f32 0.2, %v78_v29 }
  0x1b   :  { %v147_v35 = vsel %vm134_vm4, %v123_v33, %v75_v25  ;;  %v124_v36 = vsel %vm92_vm15, %v76_v27, %v108_v32 }
  0x1c   :  { %163 = vst [vmem:[%s380_s4 + $0x60] sm:$0xff] %v147_v35  ;;  %v148_v37 = vsel %vm134_vm4, %v124_v36, %v76_v27  ;;  %v125_v38 = vsel %vm93_vm0, %v77_v28, %v109_v34  ;;  %v126_v39 = vsel %vm94_vm1, %v78_v29, %v110_v3 }
  0x1d   :  { %164 = vst [vmem:[%s380_s4 + $0x68] sm:$0xff] %v148_v37  ;;  %v149_v40 = vsel %vm134_vm4, %v125_v38, %v77_v28  ;;  %v150_v41 = vsel %vm134_vm4, %v126_v39, %v78_v29 }
  0x1e   :  { %165 = vst [vmem:[%s380_s4 + $0x70] sm:$0xff] %v149_v40  ;;  %166 = vst [vmem:[%s380_s4 + $0x78] sm:$0xff] %v150_v41 }

</bundles_post_ra>
